<compile_context>
chip_gen: v6e
topology: v6e:2x2x1
jax: 0.10.0
libtpu: 0.0.40
codegen_flags: <defaults>
</compile_context>

<pallas_src>
import jax
import jax.numpy as jnp
from jax.experimental import pallas as pl
from jax.experimental.pallas import tpu as pltpu


def _pick_row_tile(H, W, in_ch, out_ch, budget_bytes=4 << 20):
    """Largest row-tile TH dividing H whose im2col working set fits the budget.

    Prefers lane-dense output blocks (TH*W % 128 == 0) and >= 2 tiles so the
    auto-pipeline has something to overlap with; falls back to the full image.
    """
    def ok(th):
        if H % th:
            return False
        lane_dense = (th * W) % 128 == 0 or th == H
        work = th * W * (9 * in_ch + 2 * out_ch) * 4  # patches + out bufs (f32)
        return lane_dense and work <= budget_bytes

    cands = [th for th in range(1, H + 1) if ok(th)]
    if not cands:
        return H
    multi = [th for th in cands if H // th >= 2]
    return max(multi) if multi else max(cands)


def _vmem_estimate_bytes(H, W, Cin, Cout, TH):
    """Rough per-core VMEM footprint (f32) used to size vmem_limit_bytes."""
    f32 = 4
    scratch = (H + 2) * (W + 2) * Cin * f32          # padded image scratch
    x_in = 2 * H * W * Cin * f32                     # double-buffered input
    w_in = 2 * 9 * Cin * Cout * f32                  # folded weights
    s_in = 2 * Cout * f32                            # BN shift
    out = 2 * Cout * TH * W * f32                    # double-buffered output
    patches = 2 * TH * W * 9 * Cin * f32             # im2col temp + operand
    return scratch + x_in + w_in + s_in + out + patches


def _make_cbr_kernel(H, W, Cin, Cout, TH):
    def cbr_kernel(x_ref, w_ref, shift_ref, o_ref, xp_ref):
        # x_ref:     (1, H, W, Cin)        unpadded NHWC image (resident per n)
        # w_ref:     (9*Cin, Cout)         BN-scale-folded, flattened weights
        # shift_ref: (1, Cout)             folded BN shift = beta - mean*scale
        # o_ref:     (1, Cout, TH*W)       channel-major, lane-dense output tile
        # xp_ref:    (H+2, W+2, Cin) VMEM  zero-padded image scratch
        i = pl.program_id(1)

        # Build the zero-padded image in VMEM once per batch element; the
        # input block index only depends on n, so it stays resident across i
        # and the grid iterates i fastest (row axis is last).
        @pl.when(i == 0)
        def _():
            xp_ref[...] = jnp.zeros_like(xp_ref)
            xp_ref[1:H + 1, 1:W + 1, :] = x_ref[0]

        row0 = pl.multiple_of(i * TH, TH)
        xp = xp_ref[pl.ds(row0, TH + 2)]                      # (TH+2, W+2, Cin)

        # im2col: 9 shifted taps concatenated on the lane (channel) axis ->
        # a single K = 9*Cin MXU matmul with M = TH*W streaming rows.
        # Tap order (dy-major, dx-minor, channel-last) matches the wrapper's
        # weight flattening order.
        taps = [xp[dy:dy + TH, dx:dx + W, :]                  # (TH, W, Cin) x9
                for dy in range(3) for dx in range(3)]
        patches = jnp.concatenate(taps, axis=-1)              # (TH, W, 9*Cin)
        patches = patches.reshape(TH * W, 9 * Cin)            # (TH*W, 9*Cin)

        y = jnp.dot(patches, w_ref[...],
                    preferred_element_type=jnp.float32)       # (TH*W, Cout)
        y = jnp.maximum(y + shift_ref[...], 0.0)              # fused BN + ReLU

        # Store channel-major: last dim TH*W (multiple of 128 whenever the
        # tile picker could arrange it) -> unmasked lane-dense vst.
        o_ref[0] = y.T.astype(o_ref.dtype)                    # (Cout, TH*W)

    return cbr_kernel


def cbr3x3(x_nchw, weight_oihw, gamma, beta, running_mean, running_var,
           eps=1e-5):
    """Fused Conv3x3(pad=1, stride=1) + BatchNorm(eval) + ReLU.

    x_nchw:      (N, Cin, H, W)    float32, PyTorch layout
    weight_oihw: (Cout, Cin, 3, 3) float32, PyTorch conv weight layout
    returns:     (N, Cout, H, W)   float32
    """
    N, Cin, H, W = x_nchw.shape
    Cout = weight_oihw.shape[0]

    # NCHW -> NHWC so channels sit on the lane axis.
    # TODO(synk): in an NHWC end-to-end pipeline this transpose disappears.
    x_nhwc = jnp.transpose(x_nchw, (0, 2, 3, 1)).astype(jnp.float32)

    # Fold BN scale into the conv weights; only the shift stays in the kernel.
    scale = gamma / jnp.sqrt(running_var + eps)                     # (Cout,)
    shift = (beta - running_mean * scale).reshape(1, Cout)
    shift = shift.astype(jnp.float32)
    w_hwio = jnp.transpose(weight_oihw, (2, 3, 1, 0))               # (3,3,Cin,Cout)
    w_hwio = w_hwio * scale[None, None, None, :]
    w2 = w_hwio.reshape(9 * Cin, Cout).astype(jnp.float32)          # (9*Cin,Cout)

    TH = _pick_row_tile(H, W, Cin, Cout)
    n_th = H // TH

    kernel = _make_cbr_kernel(H, W, Cin, Cout, TH)

    # Size the scoped-VMEM limit from the actual working set (floored at the
    # 32 MiB default, capped at the v7x 64 MiB physical VMEM per TensorCore).
    est = _vmem_estimate_bytes(H, W, Cin, Cout, TH)
    vmem_limit = int(min(64 << 20, max(32 << 20, int(1.3 * est))))

    out = pl.pallas_call(
        kernel,
        out_shape=jax.ShapeDtypeStruct((N, Cout, H * W), jnp.float32),
        grid_spec=pltpu.PrefetchScalarGridSpec(
            num_scalar_prefetch=0,
            grid=(N, n_th),
            in_specs=[
                # Full (unpadded) image, resident across the row-tile axis.
                pl.BlockSpec((1, H, W, Cin), lambda n, i: (n, 0, 0, 0)),
                pl.BlockSpec((9 * Cin, Cout), lambda n, i: (0, 0)),
                pl.BlockSpec((1, Cout), lambda n, i: (0, 0)),
            ],
            out_specs=pl.BlockSpec((1, Cout, TH * W), lambda n, i: (n, 0, i)),
            scratch_shapes=[pltpu.VMEM((H + 2, W + 2, Cin), jnp.float32)],
        ),
        compiler_params=pltpu.CompilerParams(
            # Batch axis parallel (megacore on v7x); row axis sequential
            # because the padded-image scratch is built at i == 0.
            dimension_semantics=("parallel", "arbitrary"),
            vmem_limit_bytes=vmem_limit),
    )(x_nhwc, w2, shift)

    # Free reshape (no transpose) back to the PyTorch NCHW layout.
    return out.reshape(N, Cout, H, W)


def _reference(x_nchw, weight_oihw, gamma, beta, running_mean, running_var,
               eps=1e-5):
    y = jax.lax.conv_general_dilated(
        x_nchw, weight_oihw,
        window_strides=(1, 1), padding=((1, 1), (1, 1)),
        dimension_numbers=("NCHW", "OIHW", "NCHW"))
    scale = (gamma / jnp.sqrt(running_var + eps)).reshape(1, -1, 1, 1)
    shift = (beta - running_mean * gamma / jnp.sqrt(running_var + eps)
             ).reshape(1, -1, 1, 1)
    return jnp.maximum(y * scale + shift, 0.0)


if __name__ == "__main__":
    key = jax.random.PRNGKey(0)
    kx, kw, kg, kb, km, kv = jax.random.split(key, 6)

    # Small shapes consistent with the module: inplanes=4, planes=8.
    N, Cin, H, W, Cout = 2, 4, 16, 16, 8

    x = jax.random.normal(kx, (N, Cin, H, W), dtype=jnp.float32)
    weight = jax.random.normal(kw, (Cout, Cin, 3, 3), dtype=jnp.float32) * 0.1
    gamma = 1.0 + 0.1 * jax.random.normal(kg, (Cout,), dtype=jnp.float32)
    beta = 0.1 * jax.random.normal(kb, (Cout,), dtype=jnp.float32)
    running_mean = 0.1 * jax.random.normal(km, (Cout,), dtype=jnp.float32)
    running_var = jnp.abs(jax.random.normal(kv, (Cout,), dtype=jnp.float32)) + 0.5

    out = cbr3x3(x, weight, gamma, beta, running_mean, running_var)
    out = jax.block_until_ready(out)

    ref = _reference(x, weight, gamma, beta, running_mean, running_var)
    assert out.shape == (N, Cout, H, W)
    assert jnp.max(jnp.abs(out - ref)) < 2e-4

    print("KERNEL_OK")
</pallas_src>

<mosaic_0001>
module attributes {stable_mosaic.version = 11 : i64} {
  func.func @cbr_kernel(%arg0: i32, %arg1: i32, %arg2: memref<1x16x16x4xf32, #tpu.memory_space<vmem>>, %arg3: memref<36x8xf32, #tpu.memory_space<vmem>>, %arg4: memref<1x8xf32, #tpu.memory_space<vmem>>, %arg5: memref<1x8x128xf32, #tpu.memory_space<vmem>>, %arg6: memref<18x18x4xf32, #tpu.memory_space<vmem>>) attributes {dimension_semantics = [#tpu.dimension_semantics<parallel>, #tpu.dimension_semantics<arbitrary>], iteration_bounds = array<i64: 2, 2>, scalar_prefetch = 0 : i64, scratch_operands = 1 : i64, tpu.core_type = #tpu.core_type<tc>, window_params = [{transform_indices = @transform_0, window_bounds = array<i64: 1, 16, 16, 4>}, {pipeline_mode = #tpu.pipeline_mode<synchronous>, transform_indices = @transform_1, window_bounds = array<i64: 36, 8>}, {pipeline_mode = #tpu.pipeline_mode<synchronous>, transform_indices = @transform_2, window_bounds = array<i64: 1, 8>}, {transform_indices = @transform_3, window_bounds = array<i64: 1, 8, 128>}]} {
    %c0_i32 = arith.constant 0 : i32
    %0 = arith.cmpi eq, %arg1, %c0_i32 : i32
    %1 = arith.extui %0 : i1 to i32
    %c0_i32_0 = arith.constant 0 : i32
    %2 = arith.cmpi ne, %1, %c0_i32_0 : i32
    scf.if %2 {
      %cst_10 = arith.constant 0.000000e+00 : f32
      %29 = vector.broadcast %cst_10 : f32 to vector<18x18x4xf32>
      %c0_11 = arith.constant 0 : index
      %c0_12 = arith.constant 0 : index
      %c0_13 = arith.constant 0 : index
      %30 = vector.load %arg6[%c0_11, %c0_12, %c0_13] : memref<18x18x4xf32, #tpu.memory_space<vmem>>, vector<18x18x4xf32>
      tpu.vector_store %arg6[%c0_11, %c0_12, %c0_13], %29 {strides = array<i32>} : memref<18x18x4xf32, #tpu.memory_space<vmem>>, vector<18x18x4xf32>,
      %c0_14 = arith.constant 0 : index
      %c0_15 = arith.constant 0 : index
      %c0_16 = arith.constant 0 : index
      %c0_17 = arith.constant 0 : index
      %31 = vector.load %arg2[%c0_14, %c0_15, %c0_16, %c0_17] : memref<1x16x16x4xf32, #tpu.memory_space<vmem>>, vector<1x16x16x4xf32>
      %32 = vector.shape_cast %31 : vector<1x16x16x4xf32> to vector<16x16x4xf32>
      %c1 = arith.constant 1 : index
      %c1_18 = arith.constant 1 : index
      %c0_19 = arith.constant 0 : index
      %33 = vector.load %arg6[%c1, %c1_18, %c0_19] : memref<18x18x4xf32, #tpu.memory_space<vmem>>, vector<16x16x4xf32>
      tpu.vector_store %arg6[%c1, %c1_18, %c0_19], %32 {strides = array<i32>} : memref<18x18x4xf32, #tpu.memory_space<vmem>>, vector<16x16x4xf32>,
    } else {
    }
    %c8_i32 = arith.constant 8 : i32
    %3 = arith.muli %arg1, %c8_i32 : i32
    %4 = tpu.assume_multiple %3, 8 : i32
    %5 = arith.index_cast %4 : i32 to index
    %c0 = arith.constant 0 : index
    %c0_1 = arith.constant 0 : index
    %6 = vector.load %arg6[%5, %c0, %c0_1] : memref<18x18x4xf32, #tpu.memory_space<vmem>>, vector<10x18x4xf32>
    %7 = vector.extract_strided_slice %6 {offsets = [0, 0, 0], sizes = [8, 16, 4], strides = [1, 1, 1]} : vector<10x18x4xf32> to vector<8x16x4xf32>
    %8 = vector.extract_strided_slice %6 {offsets = [0, 1, 0], sizes = [8, 16, 4], strides = [1, 1, 1]} : vector<10x18x4xf32> to vector<8x16x4xf32>
    %9 = vector.extract_strided_slice %6 {offsets = [0, 2, 0], sizes = [8, 16, 4], strides = [1, 1, 1]} : vector<10x18x4xf32> to vector<8x16x4xf32>
    %10 = vector.extract_strided_slice %6 {offsets = [1, 0, 0], sizes = [8, 16, 4], strides = [1, 1, 1]} : vector<10x18x4xf32> to vector<8x16x4xf32>
    %11 = vector.extract_strided_slice %6 {offsets = [1, 1, 0], sizes = [8, 16, 4], strides = [1, 1, 1]} : vector<10x18x4xf32> to vector<8x16x4xf32>
    %12 = vector.extract_strided_slice %6 {offsets = [1, 2, 0], sizes = [8, 16, 4], strides = [1, 1, 1]} : vector<10x18x4xf32> to vector<8x16x4xf32>
    %13 = vector.extract_strided_slice %6 {offsets = [2, 0, 0], sizes = [8, 16, 4], strides = [1, 1, 1]} : vector<10x18x4xf32> to vector<8x16x4xf32>
    %14 = vector.extract_strided_slice %6 {offsets = [2, 1, 0], sizes = [8, 16, 4], strides = [1, 1, 1]} : vector<10x18x4xf32> to vector<8x16x4xf32>
    %15 = vector.extract_strided_slice %6 {offsets = [2, 2, 0], sizes = [8, 16, 4], strides = [1, 1, 1]} : vector<10x18x4xf32> to vector<8x16x4xf32>
    %16 = tpu.concatenate %7, %8, %9, %10, %11, %12, %13, %14, %15 in 2 : vector<8x16x4xf32>, vector<8x16x4xf32>, vector<8x16x4xf32>, vector<8x16x4xf32>, vector<8x16x4xf32>, vector<8x16x4xf32>, vector<8x16x4xf32>, vector<8x16x4xf32>, vector<8x16x4xf32> -> vector<8x16x36xf32>
    %17 = vector.shape_cast %16 : vector<8x16x36xf32> to vector<128x36xf32>
    %c0_2 = arith.constant 0 : index
    %c0_3 = arith.constant 0 : index
    %18 = vector.load %arg3[%c0_2, %c0_3] : memref<36x8xf32, #tpu.memory_space<vmem>>, vector<36x8xf32>
    %cst = arith.constant dense<0.000000e+00> : vector<128x8xf32>
    %19 = tpu.matmul %17, %18, %cst {dimension_numbers = #tpu.dot_dimension_numbers<[1], [0], [0], [1], [0, 0, 1, 1], [], []>} : vector<128x36xf32>, vector<36x8xf32>, vector<128x8xf32> -> vector<128x8xf32>
    %c0_4 = arith.constant 0 : index
    %c0_5 = arith.constant 0 : index
    %20 = vector.load %arg4[%c0_4, %c0_5] : memref<1x8xf32, #tpu.memory_space<vmem>>, vector<1x8xf32>
    %21 = vector.broadcast %20 : vector<1x8xf32> to vector<128x8xf32>
    %22 = arith.addf %19, %21 : vector<128x8xf32>
    %cst_6 = arith.constant 0.000000e+00 : f32
    %23 = vector.broadcast %cst_6 : f32 to vector<128x8xf32>
    %24 = arith.maximumf %22, %23 : vector<128x8xf32>
    %25 = tpu.transpose %24, [1, 0] : vector<128x8xf32> -> vector<8x128xf32>
    %c0_7 = arith.constant 0 : index
    %c0_8 = arith.constant 0 : index
    %c0_9 = arith.constant 0 : index
    %26 = vector.load %arg5[%c0_7, %c0_8, %c0_9] : memref<1x8x128xf32, #tpu.memory_space<vmem>>, vector<1x8x128xf32>
    %27 = vector.shape_cast %26 : vector<1x8x128xf32> to vector<8x128xf32>
    %28 = vector.shape_cast %25 : vector<8x128xf32> to vector<1x8x128xf32>
    tpu.vector_store %arg5[%c0_7, %c0_8, %c0_9], %28 {strides = array<i32>} : memref<1x8x128xf32, #tpu.memory_space<vmem>>, vector<1x8x128xf32>,
    return
  }
  func.func @transform_0(%arg0: i32, %arg1: i32) -> (i32, i32, i32, i32) {
    %c0_i32 = arith.constant 0 : i32
    %c0_i32_0 = arith.constant 0 : i32
    %c0_i32_1 = arith.constant 0 : i32
    %c0_i32_2 = arith.constant 0 : i32
    return %arg0, %c0_i32, %c0_i32_0, %c0_i32_1 : i32, i32, i32, i32
  }
  func.func @transform_1(%arg0: i32, %arg1: i32) -> (i32, i32) {
    %c0_i32 = arith.constant 0 : i32
    %c0_i32_0 = arith.constant 0 : i32
    %c0_i32_1 = arith.constant 0 : i32
    return %c0_i32, %c0_i32_0 : i32, i32
  }
  func.func @transform_2(%arg0: i32, %arg1: i32) -> (i32, i32) {
    %c0_i32 = arith.constant 0 : i32
    %c0_i32_0 = arith.constant 0 : i32
    %c0_i32_1 = arith.constant 0 : i32
    return %c0_i32, %c0_i32_0 : i32, i32
  }
  func.func @transform_3(%arg0: i32, %arg1: i32) -> (i32, i32, i32) {
    %c0_i32 = arith.constant 0 : i32
    %c0_i32_0 = arith.constant 0 : i32
    return %arg0, %c0_i32, %arg1 : i32, i32, i32
  }
}

</mosaic_0001>

<bundles_post_ra>
// kernel: tpu_custom_call.1
= control target key start
LH: loop header
LB: loop body
LE: loop exit
PB: predicated region body
PF: predicated region fallthrough
CT: control target
= control target key end

     0   :  { %8 = vsyncpa [#allocation4], 0  ;;  %s2486_s0 = inlined_call_operand.vmem [shape: f32[2,16,16,4], index: 0, kind: input, shape index: {}]   ;;  %s2487_s1 = inlined_call_operand.vmem [shape: f32[36,8], index: 1, kind: input, shape index: {}]   ;;  %s2488_s2 = inlined_call_operand.vmem [shape: f32[1,8], index: 2, kind: input, shape index: {}]   ;;  %s2489_s3 = inlined_call_operand.hbm [shape: f32[2,8,256], index: 3, kind: output, shape index: {}]  }
   0x1   :  { %10 = vsyncpa [#allocation4 + $0x1], 0  ;;  %s1646_s12 = smov 0   ;;  %s1648_s13 = smov 0  }
   0x2   :  { %s1650_s14 = smov 0   ;;  %s1652_s15 = smov 0  }
   0x3   :  { %s1654_s16 = smov 0   ;;  %s1656_s17 = smov 0  }
   0x4   :  { %s1658_s18 = smov 0   ;;  %s1660_s19 = smov 0  }
   0x5 LB: > { %s1342_s20 = sadd.s32 4294967295, %s1614_s19   ;;  %s1343_s21 = sadd.s32 4294967294, %s1614_s19   ;;  %s1614_s19 = sphi %s1660_s19, %s16_s19   ;;  %s1610_s18 = sphi %s1658_s18, %s2500_s18   ;;  %s1606_s17 = sphi %s1656_s17, %s2499_s17   ;;  %s1602_s16 = sphi %s1654_s16, %s2498_s16   ;;  %s1598_s15 = sphi %s1652_s15, %s2497_s15   ;;  %s1594_s14 = sphi %s1650_s14, %s2496_s14   ;;  %s1590_s13 = sphi %s1648_s13, %s2495_s13   ;;  %s1586_s12 = sphi %s1646_s12, %s2494_s12  }
   0x6   : > { %s25_s22 = sadd.s32 1, %s1606_s17  ;;  %s28_s23 = sadd.s32 1, %s1610_s18 }
   0x7   : > { %p26_p0 = scmp.ge.s32.totalorder %s25_s22, 2  ;;  %p115_p1 = scmp.ne.s32.totalorder %s1594_s14, %s1590_s13 }
   0x8   : > { %p116_p2 = scmp.eq.s32.totalorder %s1342_s20, 3  ;;  %p121_p5 = scmp.ne.s32.totalorder %s1590_s13, %s1586_s12 }
   0x9   : > { %s2502_s22 = smov (%p26_p0, %s25_s22), 0  ;;  %s2504_s23 = smov (!%p26_p0, %s28_s23), %s1610_s18 }
   0xa   : > { %s101_s24 = ssub.s32 %s1606_s17, %s2502_s22  ;;  %p1697_p3 = por %p116_p2, %p115_p1 }
   0xb   : > { %p30_p4 = scmp.ge.s32.totalorder %s2504_s23, 2  ;;  %p122_p6 = scmp.eq.s32.totalorder %s1343_s21, 3 }
   0xc   : > { %p1346_p7 = scmp.ge.s32.totalorder %s1614_s19, 1  ;;  %p154_p9 = scmp.lt.s32.totalorder %s1614_s19, 5 }
   0xd   : > { %s2506_s23 = smov (%p30_p4, %s2504_s23), 0  ;;  %p1706_p8 = por %p122_p6, %p121_p5 }
   0xe   : > { %s100_s27 = ssub.s32 %s1610_s18, %s2506_s23  ;;  %s105_s28 = sadd.s32 1, %s1594_s14 }
   0xf   : > { %s102_s29 = sor.u32 %s101_s24, %s100_s27  ;;  %p155_p10 = pnand %p1346_p7, %p154_p9 }
  0x10   : > { %p103_p11 = scmp.eq.s32.totalorder %s102_s29, 0  ;;  %s2490_s4 = sand.u32 (!%p155_p10), 1, %s1590_s13  }
  0x11   : > { %158 = sbr.rel (%p155_p10) target bundleno = 732 (0x2dc), region = 32  ;;  %p178_p12 = scmp.lt.s32.totalorder (!%p155_p10), %s1602_s16, 1 }
  0x12   : > { %s1715_s30 = scalar_select %p103_p11, %s1594_s14, %s105_s28  }
  0x13   : > { %s1721_s5 = sshll.u32 (!%p155_p10), %s2490_s4, 3  ;;  %p1350_p13 = scmp.ne.s32.totalorder (!%p155_p10), %s1598_s15, 0 }
  0x14   : > { %s177_s11 = scalar_lea.vmem (!%p155_p10), [#allocation3], %s1721_s5 }
  0x16   : > { %s179_s6 = scalar_select %p178_p12, %s1602_s16, 1 }
  0x17   : > { %186 = sbr.rel (%p1350_p13) target bundleno = 72 (0x48), region = 36 }
  0x18   : > { %s1376_s7 = sshll.u32 %s179_s6, 8 }
  0x19   : > { %s1727_s10 = scalar_lea.vmem %s2486_s0, %s1376_s7 }
  0x1c   : > { %vm187_vm0 = vcmask 31744   ;;  %vm190_vm1 = vcmask 25600   ;;  %v243_v0 = vld [vmem:[%s1727_s10] sm:$0xff]  ;;  %v244_v1 = vld [vmem:[%s1727_s10 + $0x8] sm:$0xff]  ;;  %v245_v2 = vld [vmem:[%s1727_s10 + $0x10] sm:$0xff]  ;;  %v1616_v3 = vmov 0.0  }
  0x1d   : > { %192 = vst.msk [vmem:[#allocation2 + $0x18] sm:$0xff] %vm187_vm0, %v1616_v3  ;;  %188 = vst.msk [vmem:[#allocation2] sm:$0xff] %vm187_vm0, %v1616_v3  ;;  %v246_v4 = vld [vmem:[%s1727_s10 + $0x18] sm:$0xff]  ;;  %v247_v5 = vld [vmem:[%s1727_s10 + $0x20] sm:$0xff] }
  0x1e   : > { %189 = vst.msk [vmem:[#allocation2 + $0x8] sm:$0xff] %vm187_vm0, %v1616_v3  ;;  %193 = vst.msk [vmem:[#allocation2 + $0x20] sm:$0xff] %vm187_vm0, %v1616_v3  ;;  %v248_v6 = vld [vmem:[%s1727_s10 + $0x28] sm:$0xff]  ;;  %v249_v7 = vld [vmem:[%s1727_s10 + $0x30] sm:$0xff] }
  0x1f   : > { %195 = vst.msk [vmem:[#allocation2 + $0x30] sm:$0xff] %vm187_vm0, %v1616_v3  ;;  %196 = vst.msk [vmem:[#allocation2 + $0x38] sm:$0xff] %vm187_vm0, %v1616_v3  ;;  %v250_v8 = vld [vmem:[%s1727_s10 + $0x38] sm:$0xff]  ;;  %v251_v9 = vld [vmem:[%s1727_s10 + $0x40] sm:$0xff] }
  0x20   : > { %198 = vst.msk [vmem:[#allocation2 + $0x48] sm:$0xff] %vm187_vm0, %v1616_v3  ;;  %199 = vst.msk [vmem:[#allocation2 + $0x50] sm:$0xff] %vm187_vm0, %v1616_v3  ;;  %v252_v10 = vld [vmem:[%s1727_s10 + $0x48] sm:$0xff]  ;;  %v253_v11 = vld [vmem:[%s1727_s10 + $0x50] sm:$0xff] }
  0x21   : > { %201 = vst.msk [vmem:[#allocation2 + $0x60] sm:$0xff] %vm187_vm0, %v1616_v3  ;;  %202 = vst.msk [vmem:[#allocation2 + $0x68] sm:$0xff] %vm187_vm0, %v1616_v3  ;;  %v254_v12 = vld [vmem:[%s1727_s10 + $0x58] sm:$0xff]  ;;  %v255_v13 = vld [vmem:[%s1727_s10 + $0x60] sm:$0xff] }
  0x22   : > { %204 = vst.msk [vmem:[#allocation2 + $0x78] sm:$0xff] %vm187_vm0, %v1616_v3  ;;  %205 = vst.msk [vmem:[#allocation2 + $0x80] sm:$0xff] %vm187_vm0, %v1616_v3  ;;  %v256_v14 = vld [vmem:[%s1727_s10 + $0x68] sm:$0xff]  ;;  %v257_v15 = vld [vmem:[%s1727_s10 + $0x70] sm:$0xff] }
  0x23   : > { %207 = vst.msk [vmem:[#allocation2 + $0x90] sm:$0xff] %vm187_vm0, %v1616_v3  ;;  %208 = vst.msk [vmem:[#allocation2 + $0x98] sm:$0xff] %vm187_vm0, %v1616_v3  ;;  %v258_v16 = vld [vmem:[%s1727_s10 + $0x78] sm:$0xff]  ;;  %v259_v17 = vld [vmem:[%s1727_s10 + $0x80] sm:$0xff] }
  0x24   : > { %210 = vst.msk [vmem:[#allocation2 + $0xa8] sm:$0xff] %vm187_vm0, %v1616_v3  ;;  %211 = vst.msk [vmem:[#allocation2 + $0xb0] sm:$0xff] %vm187_vm0, %v1616_v3  ;;  %v260_v18 = vld [vmem:[%s1727_s10 + $0x88] sm:$0xff]  ;;  %v261_v19 = vld [vmem:[%s1727_s10 + $0x90] sm:$0xff] }
  0x25   : > { %213 = vst.msk [vmem:[#allocation2 + $0xc0] sm:$0xff] %vm187_vm0, %v1616_v3  ;;  %214 = vst.msk [vmem:[#allocation2 + $0xc8] sm:$0xff] %vm187_vm0, %v1616_v3  ;;  %v262_v20 = vld [vmem:[%s1727_s10 + $0x98] sm:$0xff]  ;;  %v263_v21 = vld [vmem:[%s1727_s10 + $0xa0] sm:$0xff] }
  0x26   : > { %216 = vst.msk [vmem:[#allocation2 + $0xd8] sm:$0xff] %vm187_vm0, %v1616_v3  ;;  %217 = vst.msk [vmem:[#allocation2 + $0xe0] sm:$0xff] %vm187_vm0, %v1616_v3  ;;  %v264_v22 = vld [vmem:[%s1727_s10 + $0xa8] sm:$0xff]  ;;  %v265_v23 = vld [vmem:[%s1727_s10 + $0xb0] sm:$0xff] }
  0x27   : > { %219 = vst.msk [vmem:[#allocation2 + $0xf0] sm:$0xff] %vm187_vm0, %v1616_v3  ;;  %220 = vst.msk [vmem:[#allocation2 + $0xf8] sm:$0xff] %vm187_vm0, %v1616_v3  ;;  %v266_v24 = vld [vmem:[%s1727_s10 + $0xb8] sm:$0xff]  ;;  %v267_v25 = vld [vmem:[%s1727_s10 + $0xc0] sm:$0xff] }
  0x28   : > { %222 = vst.msk [vmem:[#allocation2 + $0x108] sm:$0xff] %vm187_vm0, %v1616_v3  ;;  %223 = vst.msk [vmem:[#allocation2 + $0x110] sm:$0xff] %vm187_vm0, %v1616_v3  ;;  %v268_v26 = vld [vmem:[%s1727_s10 + $0xc8] sm:$0xff]  ;;  %v269_v27 = vld [vmem:[%s1727_s10 + $0xd0] sm:$0xff] }
  0x29   : > { %225 = vst.msk [vmem:[#allocation2 + $0x120] sm:$0xff] %vm187_vm0, %v1616_v3  ;;  %226 = vst.msk [vmem:[#allocation2 + $0x128] sm:$0xff] %vm187_vm0, %v1616_v3  ;;  %v270_v28 = vld [vmem:[%s1727_s10 + $0xd8] sm:$0xff]  ;;  %v271_v29 = vld [vmem:[%s1727_s10 + $0xe0] sm:$0xff] }
  0x2a   : > { %228 = vst.msk [vmem:[#allocation2 + $0x138] sm:$0xff] %vm187_vm0, %v1616_v3  ;;  %229 = vst.msk [vmem:[#allocation2 + $0x140] sm:$0xff] %vm187_vm0, %v1616_v3  ;;  %v272_v30 = vld [vmem:[%s1727_s10 + $0xe8] sm:$0xff]  ;;  %v273_v31 = vld [vmem:[%s1727_s10 + $0xf0] sm:$0xff] }
  0x2b   : > { %231 = vst.msk [vmem:[#allocation2 + $0x150] sm:$0xff] %vm187_vm0, %v1616_v3  ;;  %232 = vst.msk [vmem:[#allocation2 + $0x158] sm:$0xff] %vm187_vm0, %v1616_v3  ;;  %v274_v32 = vld [vmem:[%s1727_s10 + $0xf8] sm:$0xff] }
  0x2c   : > { %234 = vst.msk [vmem:[#allocation2 + $0x168] sm:$0xff] %vm187_vm0, %v1616_v3  ;;  %235 = vst.msk [vmem:[#allocation2 + $0x170] sm:$0xff] %vm187_vm0, %v1616_v3 }
  0x2d   : > { %237 = vst.msk [vmem:[#allocation2 + $0x180] sm:$0xff] %vm187_vm0, %v1616_v3  ;;  %238 = vst.msk [vmem:[#allocation2 + $0x188] sm:$0xff] %vm187_vm0, %v1616_v3 }
  0x2e   : > { %240 = vst.msk [vmem:[#allocation2 + $0x198] sm:$0xff] %vm187_vm0, %v1616_v3  ;;  %241 = vst.msk [vmem:[#allocation2 + $0x1a0] sm:$0xff] %vm187_vm0, %v1616_v3 }
  0x2f   : > { %194 = vst.msk [vmem:[#allocation2 + $0x28] sm:$0x3] %vm190_vm1, %v1616_v3  ;;  %191 = vst.msk [vmem:[#allocation2 + $0x10] sm:$0x3] %vm190_vm1, %v1616_v3 }
  0x30   : > { %197 = vst.msk [vmem:[#allocation2 + $0x40] sm:$0x3] %vm190_vm1, %v1616_v3  ;;  %200 = vst.msk [vmem:[#allocation2 + $0x58] sm:$0x3] %vm190_vm1, %v1616_v3 }
  0x31   : > { %203 = vst.msk [vmem:[#allocation2 + $0x70] sm:$0x3] %vm190_vm1, %v1616_v3  ;;  %206 = vst.msk [vmem:[#allocation2 + $0x88] sm:$0x3] %vm190_vm1, %v1616_v3 }
  0x32   : > { %209 = vst.msk [vmem:[#allocation2 + $0xa0] sm:$0x3] %vm190_vm1, %v1616_v3  ;;  %212 = vst.msk [vmem:[#allocation2 + $0xb8] sm:$0x3] %vm190_vm1, %v1616_v3 }
  0x33   : > { %215 = vst.msk [vmem:[#allocation2 + $0xd0] sm:$0x3] %vm190_vm1, %v1616_v3  ;;  %218 = vst.msk [vmem:[#allocation2 + $0xe8] sm:$0x3] %vm190_vm1, %v1616_v3 }
  0x34   : > { %221 = vst.msk [vmem:[#allocation2 + $0x100] sm:$0x3] %vm190_vm1, %v1616_v3  ;;  %224 = vst.msk [vmem:[#allocation2 + $0x118] sm:$0x3] %vm190_vm1, %v1616_v3 }
  0x35   : > { %227 = vst.msk [vmem:[#allocation2 + $0x130] sm:$0x3] %vm190_vm1, %v1616_v3  ;;  %230 = vst.msk [vmem:[#allocation2 + $0x148] sm:$0x3] %vm190_vm1, %v1616_v3 }
  0x36   : > { %233 = vst.msk [vmem:[#allocation2 + $0x160] sm:$0x3] %vm190_vm1, %v1616_v3  ;;  %236 = vst.msk [vmem:[#allocation2 + $0x178] sm:$0x3] %vm190_vm1, %v1616_v3 }
  0x37   : > { %239 = vst.msk [vmem:[#allocation2 + $0x190] sm:$0x3] %vm190_vm1, %v1616_v3  ;;  %242 = vst.msk [vmem:[#allocation2 + $0x1a8] sm:$0x3] %vm190_vm1, %v1616_v3 }
  0x38   : > { %276 = vst.msk [vmem:[#allocation2 + $0x19] sm:$0xff] %vm187_vm0, %v243_v0  ;;  %277 = vst.msk [vmem:[#allocation2 + $0x21] sm:$0xff] %vm187_vm0, %v244_v1 }
  0x39   : > { %278 = vst.msk [vmem:[#allocation2 + $0x31] sm:$0xff] %vm187_vm0, %v245_v2  ;;  %279 = vst.msk [vmem:[#allocation2 + $0x39] sm:$0xff] %vm187_vm0, %v246_v4 }
  0x3a   : > { %280 = vst.msk [vmem:[#allocation2 + $0x49] sm:$0xff] %vm187_vm0, %v247_v5  ;;  %281 = vst.msk [vmem:[#allocation2 + $0x51] sm:$0xff] %vm187_vm0, %v248_v6 }
  0x3b   : > { %282 = vst.msk [vmem:[#allocation2 + $0x61] sm:$0xff] %vm187_vm0, %v249_v7  ;;  %283 = vst.msk [vmem:[#allocation2 + $0x69] sm:$0xff] %vm187_vm0, %v250_v8 }
  0x3c   : > { %284 = vst.msk [vmem:[#allocation2 + $0x79] sm:$0xff] %vm187_vm0, %v251_v9  ;;  %285 = vst.msk [vmem:[#allocation2 + $0x81] sm:$0xff] %vm187_vm0, %v252_v10 }
  0x3d   : > { %286 = vst.msk [vmem:[#allocation2 + $0x91] sm:$0xff] %vm187_vm0, %v253_v11  ;;  %287 = vst.msk [vmem:[#allocation2 + $0x99] sm:$0xff] %vm187_vm0, %v254_v12 }
  0x3e   : > { %288 = vst.msk [vmem:[#allocation2 + $0xa9] sm:$0xff] %vm187_vm0, %v255_v13  ;;  %289 = vst.msk [vmem:[#allocation2 + $0xb1] sm:$0xff] %vm187_vm0, %v256_v14 }
  0x3f   : > { %290 = vst.msk [vmem:[#allocation2 + $0xc1] sm:$0xff] %vm187_vm0, %v257_v15  ;;  %291 = vst.msk [vmem:[#allocation2 + $0xc9] sm:$0xff] %vm187_vm0, %v258_v16 }
  0x40   : > { %292 = vst.msk [vmem:[#allocation2 + $0xd9] sm:$0xff] %vm187_vm0, %v259_v17  ;;  %293 = vst.msk [vmem:[#allocation2 + $0xe1] sm:$0xff] %vm187_vm0, %v260_v18 }
  0x41   : > { %294 = vst.msk [vmem:[#allocation2 + $0xf1] sm:$0xff] %vm187_vm0, %v261_v19  ;;  %295 = vst.msk [vmem:[#allocation2 + $0xf9] sm:$0xff] %vm187_vm0, %v262_v20 }
  0x42   : > { %296 = vst.msk [vmem:[#allocation2 + $0x109] sm:$0xff] %vm187_vm0, %v263_v21  ;;  %297 = vst.msk [vmem:[#allocation2 + $0x111] sm:$0xff] %vm187_vm0, %v264_v22 }
  0x43   : > { %298 = vst.msk [vmem:[#allocation2 + $0x121] sm:$0xff] %vm187_vm0, %v265_v23  ;;  %299 = vst.msk [vmem:[#allocation2 + $0x129] sm:$0xff] %vm187_vm0, %v266_v24 }
  0x44   : > { %300 = vst.msk [vmem:[#allocation2 + $0x139] sm:$0xff] %vm187_vm0, %v267_v25  ;;  %301 = vst.msk [vmem:[#allocation2 + $0x141] sm:$0xff] %vm187_vm0, %v268_v26 }
  0x45   : > { %302 = vst.msk [vmem:[#allocation2 + $0x151] sm:$0xff] %vm187_vm0, %v269_v27  ;;  %303 = vst.msk [vmem:[#allocation2 + $0x159] sm:$0xff] %vm187_vm0, %v270_v28 }
  0x46   : > { %304 = vst.msk [vmem:[#allocation2 + $0x169] sm:$0xff] %vm187_vm0, %v271_v29  ;;  %305 = vst.msk [vmem:[#allocation2 + $0x171] sm:$0xff] %vm187_vm0, %v272_v30 }
  0x47   : > { %306 = vst.msk [vmem:[#allocation2 + $0x181] sm:$0xff] %vm187_vm0, %v273_v31  ;;  %307 = vst.msk [vmem:[#allocation2 + $0x189] sm:$0xff] %vm187_vm0, %v274_v32 }
  0x48 PF: > { %s1352_s20 = smul.u32 192, %s1598_s15  ;;  %vm454_vm2 = vcmask 1045504   ;;  %vm365_vm3 = vcmask 1046528   ;;  %s1617_s24 = smov 8   ;;  %v997_v61 = vld [vmem:[%s2487_s1 + $0x20] sm:$0xf] }
  0x49   : > { %s1618_s27 = smov 4   ;;  %s1619_s28 = smov 12   ;;  %vm1054_vm4 = vcmask 1043456   ;;  %v996_v0 = vld [vmem:[%s2487_s1 + $0x18] sm:$0xff]  ;;  %v995_v2 = vld [vmem:[%s2487_s1 + $0x10] sm:$0xff]  ;;  %v994_v4 = vld [vmem:[%s2487_s1 + $0x8] sm:$0xff] }
  0x4a   : > { %s1850_s21 = scalar_lea.vmem [#allocation2], %s1352_s20  ;;  %s1620_s29 = smov 16   ;;  %1398 = vmatprep.subr.msk.mxu0 %vm1054_vm4, %v997_v61  ;;  %1432 = vmatprep.subr.msk.mxu1 %vm1054_vm4, %v997_v61  ;;  %v993_v8 = vld [vmem:[%s2487_s1] sm:$0xff]  ;;  %vm857_vm5 = vcmask 31744   ;;  %vm874_vm6 = vcmask 64512   ;;  %vm891_vm7 = vcmask 97280  }
  0x4b   : > { %s1621_s6 = smov 20   ;;  %s1622_s7 = smov 24   ;;  %1399 = vmatpush3.msk.msra.mxu0 %vm1054_vm4, %v997_v61  ;;  %1437 = vmatpush3.msk.msra.mxu1 %vm1054_vm4, %v997_v61  ;;  %vm908_vm8 = vcmask 130048   ;;  %vm925_vm9 = vcmask 162816   ;;  %vm942_vm10 = vcmask 195584   ;;  %vm959_vm11 = vcmask 228352  }
  0x4c   : > { %1400 = vmatprep.subr.mxu0 %v996_v0  ;;  %1433 = vmatprep.subr.mxu1 %v996_v0  ;;  %s1623_s20 = smov 28   ;;  %s1624_s4 = smov 32   ;;  %vm976_vm12 = vcmask 261120   ;;  %vm1005_vm13 = vcmask 293888  }
  0x4d   : > { %1401 = vmatpush3.msra.mxu0 %v996_v0  ;;  %1438 = vmatpush3.msra.mxu1 %v996_v0  ;;  %s2493_s8 = sand.u32 1, %s1590_s13  }
  0x4e   : > { %v1853_v33 = vld [vmem:[%s1850_s21] sm:$0xff]  ;;  %v1856_v34 = vld [vmem:[%s1850_s21 + $0x8] sm:$0xff]  ;;  %v313_v35 = vld [vmem:[%s1850_s21 + $0x10] sm:$0x3]  ;;  %1402 = vmatprep.subr.mxu0 %v995_v2  ;;  %1434 = vmatprep.subr.mxu1 %v995_v2  ;;  %s1253_s9 = scalar_lea.sflag [#allocation4], %s2493_s8 }
  0x4f   : > { %v455_v36 = vrot.slane %v1853_v33, 2  ;;  %v456_v37 = vrot.slane %v1856_v34, 2  ;;  %v366_v38 = vrot.slane %v1853_v33, 1  ;;  %v367_v39 = vrot.slane %v1856_v34, 1  ;;  %v1870_v46 = vld [vmem:[%s1850_s21 + $0x20] sm:$0xff]  ;;  %v1873_v47 = vld [vmem:[%s1850_s21 + $0x18] sm:$0xff]  ;;  %1403 = vmatpush3.msra.mxu0 %v995_v2  ;;  %1439 = vmatpush3.msra.mxu1 %v995_v2 }
  0x50   : > { %v458_v40 = vrot.slane %v313_v35, 2  ;;  %v369_v41 = vrot.slane %v313_v35, 1  ;;  %v371_v48 = vrot.slane %v1873_v47, 1  ;;  %v372_v49 = vrot.slane %v1870_v46, 1  ;;  %v316_v50 = vld [vmem:[%s1850_s21 + $0x28] sm:$0x3]  ;;  %1404 = vmatprep.subr.mxu0 %v994_v4  ;;  %1435 = vmatprep.subr.mxu1 %v994_v4 }
  0x51   : > { %v457_v42 = vsel %vm454_vm2, %v455_v36, %v456_v37  ;;  %v368_v43 = vsel %vm365_vm3, %v366_v38, %v367_v39  ;;  %v460_v52 = vrot.slane %v1873_v47, 2  ;;  %v461_v53 = vrot.slane %v1870_v46, 2  ;;  %v1896_v58 = vld [vmem:[%s1850_s21 + $0x30] sm:$0xff]  ;;  %v1900_v60 = vld [vmem:[%s1850_s21 + $0x38] sm:$0xff]  ;;  %v319_v3 = vld [vmem:[%s1850_s21 + $0x40] sm:$0x3]  ;;  %1405 = vmatpush3.msra.mxu0 %v994_v4  ;;  %1440 = vmatpush3.msra.mxu1 %v994_v4 }
  0x52   : > { %495 = vrot.lane.b32.xlu1 %v457_v42, %s1617_s24  ;;  %406 = vrot.lane.b32.xlu0 %v368_v43, %s1618_s27  ;;  %v459_v44 = vsel %vm454_vm2, %v456_v37, %v458_v40  ;;  %v370_v45 = vsel %vm365_vm3, %v367_v39, %v369_v41  ;;  %v373_v51 = vsel %vm365_vm3, %v371_v48, %v372_v49  ;;  %v374_v54 = vrot.slane %v316_v50, 1  ;;  %v1947_v13 = vld [vmem:[%s1850_s21 + $0x48] sm:$0xff]  ;;  %v1950_v14 = vld [vmem:[%s1850_s21 + $0x50] sm:$0xff] }
  0x53   : > { %v462_v55 = vsel %vm454_vm2, %v460_v52, %v461_v53  ;;  %v463_v57 = vrot.slane %v316_v50, 2  ;;  %v376_v62 = vrot.slane %v1896_v58, 1  ;;  %v377_v63 = vrot.slane %v1900_v60, 1  ;;  %1406 = vmatprep.subr.mxu0 %v993_v8  ;;  %1436 = vmatprep.subr.mxu1 %v993_v8  ;;  %v322_v18 = vld [vmem:[%s1850_s21 + $0x58] sm:$0x3]  ;;  %v1982_v26 = vld [vmem:[%s1850_s21 + $0x60] sm:$0xff] }
  0x54   : > { %v375_v56 = vsel %vm365_vm3, %v372_v49, %v374_v54  ;;  %v465_v5 = vrot.slane %v1896_v58, 2  ;;  %v466_v6 = vrot.slane %v1900_v60, 2  ;;  %v379_v7 = vrot.slane %v319_v3, 1  ;;  %1407 = vmatpush3.msra.mxu0 %v993_v8  ;;  %1441 = vmatpush3.msra.mxu1 %v993_v8  ;;  %v1985_v27 = vld [vmem:[%s1850_s21 + $0x68] sm:$0xff]  ;;  %v325_v31 = vld [vmem:[%s1850_s21 + $0x70] sm:$0x3] }
  0x55   : > { %v464_v59 = vsel %vm454_vm2, %v461_v53, %v463_v57  ;;  %v378_v1 = vsel %vm365_vm3, %v376_v62, %v377_v63  ;;  %v468_v11 = vrot.slane %v319_v3, 2  ;;  %v381_v15 = vrot.slane %v1947_v13, 1  ;;  %v2017_v43 = vld [vmem:[%s1850_s21 + $0x78] sm:$0xff]  ;;  %v2024_v48 = vld [vmem:[%s1850_s21 + $0x80] sm:$0xff] }
  0x56   : > { %497 = vrot.lane.b32.xlu1 %v459_v44, %s1617_s24  ;;  %408 = vrot.lane.b32.xlu0 %v370_v45, %s1618_s27  ;;  %v467_v9 = vsel %vm454_vm2, %v465_v5, %v466_v6  ;;  %v380_v10 = vsel %vm365_vm3, %v377_v63, %v379_v7  ;;  %v382_v16 = vrot.slane %v1950_v14, 1  ;;  %v470_v19 = vrot.slane %v1947_v13, 2 }
  0x57   : > { %v469_v12 = vsel %vm454_vm2, %v466_v6, %v468_v11  ;;  %v471_v20 = vrot.slane %v1950_v14, 2  ;;  %v384_v21 = vrot.slane %v322_v18, 1  ;;  %v473_v24 = vrot.slane %v322_v18, 2 }
  0x58   : > { %v383_v17 = vsel %vm365_vm3, %v381_v15, %v382_v16  ;;  %v386_v28 = vrot.slane %v1982_v26, 1  ;;  %v387_v29 = vrot.slane %v1985_v27, 1  ;;  %v475_v32 = vrot.slane %v1982_v26, 2 }
  0x59   : > { %v472_v22 = vsel %vm454_vm2, %v470_v19, %v471_v20  ;;  %v385_v23 = vsel %vm365_vm3, %v382_v16, %v384_v21  ;;  %v474_v25 = vsel %vm454_vm2, %v471_v20, %v473_v24  ;;  %v476_v35 = vrot.slane %v1985_v27, 2  ;;  %v2071_v16 = vld [vmem:[%s1850_s21 + $0x90] sm:$0xff]  ;;  %v2079_v19 = vld [vmem:[%s1850_s21 + $0x98] sm:$0xff] }
  0x5a   : > { %547 = vrot.lane.b32.xlu1 %v1870_v46, %s1619_s28  ;;  %545 = vrot.lane.b32.xlu0 %v1873_v47, %s1619_s28  ;;  %v388_v30 = vsel %vm365_vm3, %v386_v28, %v387_v29  ;;  %v389_v36 = vrot.slane %v325_v31, 1  ;;  %v478_v39 = vrot.slane %v325_v31, 2  ;;  %v391_v49 = vrot.slane %v2017_v43, 1 }
  0x5b   : > { %v477_v37 = vsel %vm454_vm2, %v475_v32, %v476_v35  ;;  %v392_v50 = vrot.slane %v2024_v48, 1  ;;  %v480_v57 = vrot.slane %v2017_v43, 2  ;;  %v397_v24 = vrot.slane %v2079_v19, 1 }
  0x5c   : > { %v390_v38 = vsel %vm365_vm3, %v387_v29, %v389_v36  ;;  %v479_v40 = vsel %vm454_vm2, %v476_v35, %v478_v39 }
  0x5d   : > { %v393_v53 = vsel %vm365_vm3, %v391_v49, %v392_v50 }
  0x5e   : > { %410 = vrot.lane.b32.xlu1 %v373_v51, %s1618_s27  ;;  %599 = vrot.lane.b32.xlu0 %v373_v51, %s1620_s29 }
  0x62   : > { %652 = vrot.lane.b32.xlu1 %v462_v55, %s1621_s6  ;;  %601 = vrot.lane.b32.xlu0 %v375_v56, %s1620_s29 }
  0x66   : > { %499 = vrot.lane.b32.xlu1 %v462_v55, %s1617_s24  ;;  %412 = vrot.lane.b32.xlu0 %v375_v56, %s1618_s27  ;;  %v328_v56 = vld [vmem:[%s1850_s21 + $0x88] sm:$0x3] }
  0x67   : > { %v394_v61 = vrot.slane %v328_v56, 1  ;;  %v483_v4 = vrot.slane %v328_v56, 2 }
  0x6a   : > { %702 = vrot.lane.b32.xlu1 %v1896_v58, %s1622_s7  ;;  %654 = vrot.lane.b32.xlu0 %v464_v59, %s1621_s6 }
  0x6e   : > { %549 = vrot.lane.b32.xlu1 %v1896_v58, %s1619_s28  ;;  %501 = vrot.lane.b32.xlu0 %v464_v59, %s1617_s24  ;;  %v481_v59 = vrot.slane %v2024_v48, 2 }
  0x70   : > { %v482_v0 = vsel %vm454_vm2, %v480_v57, %v481_v59  ;;  %v484_v7 = vsel %vm454_vm2, %v481_v59, %v483_v4 }
  0x72   : > { %756 = vrot.lane.b32.xlu1 %v378_v1, %s1623_s20  ;;  %704 = vrot.lane.b32.xlu0 %v1900_v60, %s1622_s7 }
  0x76   : > { %603 = vrot.lane.b32.xlu1 %v378_v1, %s1620_s29  ;;  %551 = vrot.lane.b32.xlu0 %v1900_v60, %s1619_s28 }
  0x7a   : > { %809 = vrot.lane.b32.xlu1 %v467_v9, %s1624_s4  ;;  %758 = vrot.lane.b32.xlu0 %v380_v10, %s1623_s20 }
  0x7e   : > { %605 = vrot.lane.b32.xlu1 %v380_v10, %s1620_s29  ;;  %414 = vrot.lane.b32.xlu0 %v378_v1, %s1618_s27  ;;  %v395_v1 = vsel %vm365_vm3, %v392_v50, %v394_v61 }
  0x82   : > { %811 = vrot.lane.b32.xlu1 %v469_v12, %s1624_s4  ;;  %656 = vrot.lane.b32.xlu0 %v467_v9, %s1621_s6 }
  0x86   : > { %503 = vrot.lane.b32.xlu1 %v467_v9, %s1617_s24  ;;  %416 = vrot.lane.b32.xlu0 %v380_v10, %s1618_s27 }
  0x8a   : > { %706 = vrot.lane.b32.xlu1 %v1947_v13, %s1622_s7  ;;  %658 = vrot.lane.b32.xlu0 %v469_v12, %s1621_s6 }
  0x8e   : > { %553 = vrot.lane.b32.xlu1 %v1947_v13, %s1619_s28  ;;  %505 = vrot.lane.b32.xlu0 %v469_v12, %s1617_s24 }
  0x92   : > { %760 = vrot.lane.b32.xlu1 %v383_v17, %s1623_s20  ;;  %708 = vrot.lane.b32.xlu0 %v1950_v14, %s1622_s7 }
  0x96   : > { %607 = vrot.lane.b32.xlu1 %v383_v17, %s1620_s29  ;;  %555 = vrot.lane.b32.xlu0 %v1950_v14, %s1619_s28 }
  0x9a   : > { %813 = vrot.lane.b32.xlu1 %v472_v22, %s1624_s4  ;;  %762 = vrot.lane.b32.xlu0 %v385_v23, %s1623_s20 }
  0x9e   : > { %609 = vrot.lane.b32.xlu1 %v385_v23, %s1620_s29  ;;  %418 = vrot.lane.b32.xlu0 %v383_v17, %s1618_s27 }
  0xa2   : > { %815 = vrot.lane.b32.xlu1 %v474_v25, %s1624_s4  ;;  %660 = vrot.lane.b32.xlu0 %v472_v22, %s1621_s6 }
  0xa6   : > { %507 = vrot.lane.b32.xlu1 %v472_v22, %s1617_s24  ;;  %420 = vrot.lane.b32.xlu0 %v385_v23, %s1618_s27  ;;  %v396_v23 = vrot.slane %v2071_v16, 1 }
  0xa8   : > { %v398_v35 = vsel %vm365_vm3, %v396_v23, %v397_v24 }
  0xaa   : > { %710 = vrot.lane.b32.xlu1 %v1982_v26, %s1622_s7  ;;  %662 = vrot.lane.b32.xlu0 %v474_v25, %s1621_s6 }
  0xae   : > { %557 = vrot.lane.b32.xlu1 %v1982_v26, %s1619_s28  ;;  %509 = vrot.lane.b32.xlu0 %v474_v25, %s1617_s24 }
  0xb2   : > { %764 = vrot.lane.b32.xlu1 %v388_v30, %s1623_s20  ;;  %712 = vrot.lane.b32.xlu0 %v1985_v27, %s1622_s7 }
  0xb6   : > { %611 = vrot.lane.b32.xlu1 %v388_v30, %s1620_s29  ;;  %559 = vrot.lane.b32.xlu0 %v1985_v27, %s1619_s28 }
  0xba   : > { %817 = vrot.lane.b32.xlu1 %v477_v37, %s1624_s4  ;;  %766 = vrot.lane.b32.xlu0 %v390_v38, %s1623_s20 }
  0xbe   : > { %613 = vrot.lane.b32.xlu1 %v390_v38, %s1620_s29  ;;  %422 = vrot.lane.b32.xlu0 %v388_v30, %s1618_s27 }
  0xc2   : > { %819 = vrot.lane.b32.xlu1 %v479_v40, %s1624_s4  ;;  %664 = vrot.lane.b32.xlu0 %v477_v37, %s1621_s6 }
  0xc4   : > { %v496_v41 = vpop.permute.xlu1 %495  ;;  %v407_v42 = vpop.permute.xlu0 %406 }
  0xc5   : > { %v858_v10 = vsel %vm857_vm5, %v1853_v33, %v407_v42  ;;  %v485_v42 = vrot.slane %v2071_v16, 2 }
  0xc6   : > { %511 = vrot.lane.b32.xlu1 %v477_v37, %s1617_s24  ;;  %424 = vrot.lane.b32.xlu0 %v390_v38, %s1618_s27  ;;  %v875_v15 = vsel %vm874_vm6, %v858_v10, %v496_v41  ;;  %v331_v38 = vld [vmem:[%s1850_s21 + $0xa0] sm:$0x3]  ;;  %v2147_v10 = vld [vmem:[%s1850_s21 + $0xa8] sm:$0xff] }
  0xc7   : > { %v488_v59 = vrot.slane %v331_v38, 2 }
  0xc8   : > { %v2019_v44 = vpop.permute.xlu1 %497  ;;  %v2021_v45 = vpop.permute.xlu0 %408 }
  0xc9   : > { %v859_v25 = vsel %vm857_vm5, %v1856_v34, %v2021_v45  ;;  %v399_v45 = vrot.slane %v331_v38, 1 }
  0xca   : > { %714 = vrot.lane.b32.xlu1 %v2017_v43, %s1622_s7  ;;  %666 = vrot.lane.b32.xlu0 %v479_v40, %s1621_s6  ;;  %v876_v32 = vsel %vm874_vm6, %v859_v25, %v2019_v44  ;;  %v486_v44 = vrot.slane %v2079_v19, 2 }
  0xcc   : > { %v2031_v51 = vpop.permute.xlu1 %547  ;;  %v546_v52 = vpop.permute.xlu0 %545 }
  0xcd   : > { %v892_v17 = vsel %vm891_vm7, %v875_v15, %v546_v52  ;;  %v893_v34 = vsel %vm891_vm7, %v876_v32, %v2031_v51 }
  0xce   : > { %561 = vrot.lane.b32.xlu1 %v2017_v43, %s1619_s28  ;;  %513 = vrot.lane.b32.xlu0 %v479_v40, %s1617_s24 }
  0xd0   : > { %v2037_v54 = vpop.permute.xlu1 %410  ;;  %v600_v55 = vpop.permute.xlu0 %599 }
  0xd1   : > { %v909_v20 = vsel %vm908_vm8, %v892_v17, %v600_v55  ;;  %v400_v55 = vsel %vm365_vm3, %v397_v24, %v399_v45  ;;  %v2156_v17 = vld [vmem:[%s1850_s21 + $0xb0] sm:$0xff] }
  0xd2   : > { %768 = vrot.lane.b32.xlu1 %v393_v53, %s1623_s20  ;;  %716 = vrot.lane.b32.xlu0 %v2024_v48, %s1622_s7 }
  0xd4   : > { %v653_v62 = vpop.permute.xlu1 %652  ;;  %v602_v63 = vpop.permute.xlu0 %601 }
  0xd5   : > { %v926_v21 = vsel %vm925_vm9, %v909_v20, %v653_v62  ;;  %v910_v39 = vsel %vm908_vm8, %v893_v34, %v602_v63  ;;  %v489_v63 = vsel %vm454_vm2, %v486_v44, %v488_v59  ;;  %v402_v20 = vrot.slane %v2156_v17, 1 }
  0xd6   : > { %615 = vrot.lane.b32.xlu1 %v393_v53, %s1620_s29  ;;  %563 = vrot.lane.b32.xlu0 %v2024_v48, %s1619_s28 }
  0xd8   : > { %v2050_v2 = vpop.permute.xlu1 %499  ;;  %v2052_v3 = vpop.permute.xlu0 %412 }
  0xd9   : > { %v861_v24 = vsel %vm857_vm5, %v1870_v46, %v2052_v3  ;;  %v334_v46 = vld [vmem:[%s1850_s21 + $0xb8] sm:$0x3] }
  0xda   : > { %821 = vrot.lane.b32.xlu1 %v482_v0, %s1624_s4  ;;  %770 = vrot.lane.b32.xlu0 %v395_v1, %s1623_s20  ;;  %v404_v34 = vrot.slane %v334_v46, 1 }
  0xdc   : > { %v703_v5 = vpop.permute.xlu1 %702  ;;  %v655_v6 = vpop.permute.xlu0 %654 }
  0xdd   : > { %v943_v22 = vsel %vm942_vm10, %v926_v21, %v703_v5  ;;  %v927_v40 = vsel %vm925_vm9, %v910_v39, %v655_v6  ;;  %v860_v6 = vsel %vm857_vm5, %v1873_v47, %v2037_v54 }
  0xde   : > { %617 = vrot.lane.b32.xlu1 %v395_v1, %s1620_s29  ;;  %426 = vrot.lane.b32.xlu0 %v393_v53, %s1618_s27  ;;  %v487_v53 = vsel %vm454_vm2, %v485_v42, %v486_v44  ;;  %v405_v42 = vsel %vm365_vm3, %v402_v20, %v404_v34 }
  0xe0   : > { %v2059_v8 = vpop.permute.xlu1 %549  ;;  %v2061_v9 = vpop.permute.xlu0 %501 }
  0xe1   : > { %v878_v25 = vsel %vm874_vm6, %v861_v24, %v2061_v9 }
  0xe2   : > { %823 = vrot.lane.b32.xlu1 %v484_v7, %s1624_s4  ;;  %668 = vrot.lane.b32.xlu0 %v482_v0, %s1621_s6 }
  0xe4   : > { %v757_v11 = vpop.permute.xlu1 %756  ;;  %v705_v12 = vpop.permute.xlu0 %704 }
  0xe5   : > { %v960_v28 = vsel %vm959_vm11, %v943_v22, %v757_v11  ;;  %v944_v41 = vsel %vm942_vm10, %v927_v40, %v705_v12 }
  0xe6   : > { %515 = vrot.lane.b32.xlu1 %v482_v0, %s1617_s24  ;;  %428 = vrot.lane.b32.xlu0 %v395_v1, %s1618_s27 }
  0xe8   : > { %v2074_v18 = vpop.permute.xlu1 %603  ;;  %v2076_v33 = vpop.permute.xlu0 %551 }
  0xea   : > { %718 = vrot.lane.b32.xlu1 %v2071_v16, %s1622_s7  ;;  %670 = vrot.lane.b32.xlu0 %v484_v7, %s1621_s6 }
  0xec   : > { %v810_v29 = vpop.permute.xlu1 %809  ;;  %v759_v30 = vpop.permute.xlu0 %758 }
  0xed   : > { %v977_v31 = vsel %vm976_vm12, %v960_v28, %v810_v29  ;;  %v961_v49 = vsel %vm959_vm11, %v944_v41, %v759_v30  ;;  %v895_v29 = vsel %vm891_vm7, %v878_v25, %v2076_v33  ;;  %v491_v33 = vrot.slane %v2156_v17, 2  ;;  %v337_v25 = vld [vmem:[%s1850_s21 + $0xd0] sm:$0x3] }
  0xee   : > { %565 = vrot.lane.b32.xlu1 %v2071_v16, %s1619_s28  ;;  %517 = vrot.lane.b32.xlu0 %v484_v7, %s1617_s24  ;;  %v877_v7 = vsel %vm874_vm6, %v860_v6, %v2050_v2 }
  0xef   : > { %1408 = vmatprep.mubr.msk.f32.mxu0 %vm1005_vm13, %v977_v31  ;;  %v894_v11 = vsel %vm891_vm7, %v877_v7, %v2059_v8  ;;  %v401_v8 = vrot.slane %v2147_v10, 1 }
  0xf0   : > { %v2103_v36 = vpop.permute.xlu1 %605  ;;  %v2105_v37 = vpop.permute.xlu0 %414  ;;  %v911_v47 = vsel %vm908_vm8, %v894_v11, %v2074_v18  ;;  %v336_v11 = vld [vmem:[%s1850_s21 + $0xc8] sm:$0xff] }
  0xf1   : > { %v403_v28 = vsel %vm365_vm3, %v401_v8, %v402_v20  ;;  %v912_v3 = vsel %vm908_vm8, %v895_v29, %v2103_v36  ;;  %v648_v29 = vrot.slane %v336_v11, 2 }
  0xf2   : > { %772 = vrot.lane.b32.xlu1 %v398_v35, %s1623_s20  ;;  %720 = vrot.lane.b32.xlu0 %v2079_v19, %s1622_s7 }
  0xf4   : > { %v812_v50 = vpop.permute.xlu1 %811  ;;  %v657_v51 = vpop.permute.xlu0 %656 }
  0xf5   : > { %v978_v52 = vsel %vm976_vm12, %v961_v49, %v812_v50  ;;  %v928_v54 = vsel %vm925_vm9, %v911_v47, %v657_v51  ;;  %v493_v49 = vrot.slane %v334_v46, 2  ;;  %v597_v46 = vrot.slane %v337_v25, 1 }
  0xf6   : > { %619 = vrot.lane.b32.xlu1 %v398_v35, %s1620_s29  ;;  %567 = vrot.lane.b32.xlu0 %v2079_v19, %s1619_s28 }
  0xf7   : > { %1409 = vmatmul.mubr.msk.f32.vlgmr.msra.gmra.mxu0 %vm1005_vm13, %v978_v52  ;;  %v494_v52 = vsel %vm454_vm2, %v491_v33, %v493_v49  ;;  %v339_v49 = vld [vmem:[%s1850_s21 + $0xe0] sm:$0xff] }
  0xf8   : > { %v2124_v56 = vpop.permute.xlu1 %503  ;;  %v2126_v57 = vpop.permute.xlu0 %416 }
  0xfa   : > { %825 = vrot.lane.b32.xlu1 %v487_v53, %s1624_s4  ;;  %774 = vrot.lane.b32.xlu0 %v400_v55, %s1623_s20 }
  0xfc   : > { %v707_v61 = vpop.permute.xlu1 %706  ;;  %v659_v62 = vpop.permute.xlu0 %658 }
  0xfd   : > { %v945_v2 = vsel %vm942_vm10, %v928_v54, %v707_v61  ;;  %v929_v32 = vsel %vm925_vm9, %v912_v3, %v659_v62  ;;  %v862_v62 = vsel %vm857_vm5, %v1896_v58, %v2105_v37  ;;  %v595_v54 = vrot.slane %v336_v11, 1 }
  0xfe   : > { %621 = vrot.lane.b32.xlu1 %v400_v55, %s1620_s29  ;;  %430 = vrot.lane.b32.xlu0 %v398_v35, %s1618_s27  ;;  %v490_v35 = vrot.slane %v2147_v10, 2 }
 0x100   : > { %v2133_v0 = vpop.permute.xlu1 %553  ;;  %v2135_v1 = vpop.permute.xlu0 %505  ;;  %v492_v41 = vsel %vm454_vm2, %v490_v35, %v491_v33  ;;  %v598_v35 = vsel %vm365_vm3, %v595_v54, %v597_v46 }
 0x102   : > { %827 = vrot.lane.b32.xlu1 %v489_v63, %s1624_s4  ;;  %672 = vrot.lane.b32.xlu0 %v487_v53, %s1621_s6 }
 0x104   : > { %v761_v4 = vpop.permute.xlu1 %760  ;;  %v709_v5 = vpop.permute.xlu0 %708 }
 0x105   : > { %v962_v21 = vsel %vm959_vm11, %v945_v2, %v761_v4  ;;  %v946_v9 = vsel %vm942_vm10, %v929_v32, %v709_v5  ;;  %v335_v4 = vld [vmem:[%s1850_s21 + $0xc0] sm:$0xff] }
 0x106   : > { %519 = vrot.lane.b32.xlu1 %v487_v53, %s1617_s24  ;;  %432 = vrot.lane.b32.xlu0 %v400_v55, %s1618_s27 }
 0x108   : > { %v2151_v12 = vpop.permute.xlu1 %607  ;;  %v2153_v15 = vpop.permute.xlu0 %555 }
 0x10a   : > { %722 = vrot.lane.b32.xlu1 %v2147_v10, %s1622_s7  ;;  %674 = vrot.lane.b32.xlu0 %v489_v63, %s1621_s6 }
 0x10c   : > { %v814_v22 = vpop.permute.xlu1 %813  ;;  %v763_v23 = vpop.permute.xlu0 %762 }
 0x10d   : > { %v979_v18 = vsel %vm976_vm12, %v962_v21, %v814_v22  ;;  %v963_v38 = vsel %vm959_vm11, %v946_v9, %v763_v23 }
 0x10e   : > { %569 = vrot.lane.b32.xlu1 %v2147_v10, %s1619_s28  ;;  %521 = vrot.lane.b32.xlu0 %v489_v63, %s1617_s24  ;;  %v879_v63 = vsel %vm874_vm6, %v862_v62, %v2124_v56  ;;  %v594_v56 = vrot.slane %v335_v4, 1 }
 0x10f   : > { %1411 = vmatprep.mubr.msk.f32.mxu0 %vm1005_vm13, %v979_v18  ;;  %v896_v5 = vsel %vm891_vm7, %v879_v63, %v2133_v0 }
 0x110   : > { %v2181_v30 = vpop.permute.xlu1 %609  ;;  %v2183_v31 = vpop.permute.xlu0 %418  ;;  %v913_v47 = vsel %vm908_vm8, %v896_v5, %v2151_v12  ;;  %v863_v12 = vsel %vm857_vm5, %v1900_v60, %v2126_v57  ;;  %v596_v22 = vsel %vm365_vm3, %v594_v56, %v595_v54  ;;  %v805_v5 = vrot.slane %v339_v49, 2 }
 0x111   : > { %v880_v21 = vsel %vm874_vm6, %v863_v12, %v2135_v1 }
 0x112   : > { %776 = vrot.lane.b32.xlu1 %v403_v28, %s1623_s20  ;;  %724 = vrot.lane.b32.xlu0 %v2156_v17, %s1622_s7  ;;  %v897_v23 = vsel %vm891_vm7, %v880_v21, %v2153_v15 }
 0x113   : > { %v914_v60 = vsel %vm908_vm8, %v897_v23, %v2181_v30 }
 0x114   : > { %v816_v39 = vpop.permute.xlu1 %815  ;;  %v661_v40 = vpop.permute.xlu0 %660 }
 0x115   : > { %v980_v36 = vsel %vm976_vm12, %v963_v38, %v816_v39  ;;  %v930_v58 = vsel %vm925_vm9, %v913_v47, %v661_v40  ;;  %v650_v38 = vrot.slane %v337_v25, 2 }
 0x116   : > { %623 = vrot.lane.b32.xlu1 %v403_v28, %s1620_s29  ;;  %571 = vrot.lane.b32.xlu0 %v2156_v17, %s1619_s28 }
 0x117   : > { %1412 = vmatmul.mubr.msk.f32.gmra.mxu0 %vm1005_vm13, %v980_v36  ;;  %v651_v36 = vsel %vm454_vm2, %v648_v29, %v650_v38 }
 0x118   : > { %v2203_v44 = vpop.permute.xlu1 %507  ;;  %v2205_v45 = vpop.permute.xlu0 %420 }
 0x11a   : > { %829 = vrot.lane.b32.xlu1 %v492_v41, %s1624_s4  ;;  %778 = vrot.lane.b32.xlu0 %v405_v42, %s1623_s20 }
 0x11c   : > { %v711_v50 = vpop.permute.xlu1 %710  ;;  %v663_v51 = vpop.permute.xlu0 %662 }
 0x11d   : > { %v947_v37 = vsel %vm942_vm10, %v930_v58, %v711_v50  ;;  %v931_v57 = vsel %vm925_vm9, %v914_v60, %v663_v51  ;;  %v338_v50 = vld [vmem:[%s1850_s21 + $0xd8] sm:$0xff]  ;;  %v340_v51 = vld [vmem:[%s1850_s21 + $0xe8] sm:$0x3] }
 0x11e   : > { %625 = vrot.lane.b32.xlu1 %v405_v42, %s1620_s29  ;;  %434 = vrot.lane.b32.xlu0 %v403_v28, %s1618_s27  ;;  %v647_v28 = vrot.slane %v335_v4, 2  ;;  %v807_v56 = vrot.slane %v340_v51, 2 }
 0x120   : > { %v2212_v53 = vpop.permute.xlu1 %557  ;;  %v2214_v55 = vpop.permute.xlu0 %509  ;;  %v649_v30 = vsel %vm454_vm2, %v647_v28, %v648_v29 }
 0x122   : > { %831 = vrot.lane.b32.xlu1 %v494_v52, %s1624_s4  ;;  %676 = vrot.lane.b32.xlu0 %v492_v41, %s1621_s6 }
 0x124   : > { %v765_v59 = vpop.permute.xlu1 %764  ;;  %v713_v61 = vpop.permute.xlu0 %712 }
 0x125   : > { %v964_v0 = vsel %vm959_vm11, %v947_v37, %v765_v59  ;;  %v948_v1 = vsel %vm942_vm10, %v931_v57, %v713_v61  ;;  %v751_v59 = vrot.slane %v338_v50, 1  ;;  %v754_v61 = vrot.slane %v340_v51, 1 }
 0x126   : > { %523 = vrot.lane.b32.xlu1 %v492_v41, %s1617_s24  ;;  %436 = vrot.lane.b32.xlu0 %v405_v42, %s1618_s27  ;;  %s1372_s27 = sshll.u32 %s1602_s16, 1 }
 0x128   : > { %v2228_v6 = vpop.permute.xlu1 %611  ;;  %v2230_v7 = vpop.permute.xlu0 %559 }
 0x12a   : > { %726 = vrot.lane.b32.xlu1 %v335_v4, %s1622_s7  ;;  %678 = vrot.lane.b32.xlu0 %v494_v52, %s1621_s6 }
 0x12c   : > { %v818_v2 = vpop.permute.xlu1 %817  ;;  %v767_v8 = vpop.permute.xlu0 %766 }
 0x12d   : > { %v981_v20 = vsel %vm976_vm12, %v964_v0, %v818_v2  ;;  %v965_v15 = vsel %vm959_vm11, %v948_v1, %v767_v8  ;;  %v808_v8 = vsel %vm454_vm2, %v805_v5, %v807_v56 }
 0x12e   : > { %573 = vrot.lane.b32.xlu1 %v335_v4, %s1619_s28  ;;  %525 = vrot.lane.b32.xlu0 %v494_v52, %s1617_s24  ;;  %v752_v52 = vrot.slane %v339_v49, 1  ;;  %v864_v4 = vsel %vm857_vm5, %v1947_v13, %v2183_v31 }
 0x12f   : > { %1414 = vmatprep.mubr.msk.f32.mxu0 %vm1005_vm13, %v981_v20  ;;  %v881_v47 = vsel %vm874_vm6, %v864_v4, %v2203_v44 }
 0x130   : > { %v2252_v18 = vpop.permute.xlu1 %613  ;;  %v2254_v24 = vpop.permute.xlu0 %422  ;;  %v755_v58 = vsel %vm365_vm3, %v752_v52, %v754_v61  ;;  %v753_v37 = vsel %vm365_vm3, %v751_v59, %v752_v52  ;;  %v898_v54 = vsel %vm891_vm7, %v881_v47, %v2212_v53 }
 0x131   : > { %v915_v13 = vsel %vm908_vm8, %v898_v54, %v2228_v6  ;;  %v865_v6 = vsel %vm857_vm5, %v1950_v14, %v2205_v45  ;;  %v866_v38 = vsel %vm857_vm5, %v1982_v26, %v2254_v24 }
 0x132   : > { %780 = vrot.lane.b32.xlu1 %v596_v22, %s1623_s20  ;;  %728 = vrot.lane.b32.xlu0 %v336_v11, %s1622_s7  ;;  %v882_v23 = vsel %vm874_vm6, %v865_v6, %v2214_v55 }
 0x133   : > { %v899_v25 = vsel %vm891_vm7, %v882_v23, %v2230_v7 }
 0x134   : > { %v820_v3 = vpop.permute.xlu1 %819  ;;  %v665_v32 = vpop.permute.xlu0 %664  ;;  %v916_v1 = vsel %vm908_vm8, %v899_v25, %v2252_v18 }
 0x135   : > { %v982_v9 = vsel %vm976_vm12, %v965_v15, %v820_v3  ;;  %v932_v31 = vsel %vm925_vm9, %v915_v13, %v665_v32 }
 0x136   : > { %627 = vrot.lane.b32.xlu1 %v596_v22, %s1620_s29  ;;  %575 = vrot.lane.b32.xlu0 %v336_v11, %s1619_s28  ;;  %v804_v11 = vrot.slane %v338_v50, 2  ;;  %s1264_s28 = sadd.s32 %s1598_s15, %s1372_s27  ;;  %s1625_s15 = smov [#allocation3]  }
 0x137   : > { %1415 = vmatmul.mubr.msk.f32.gmra.mxu0 %vm1005_vm13, %v982_v9  ;;  %s1526_s16 = sshll.u32 %s1625_s15, 4  ;;  %s1527_s16 = int_to_ptr.vmem [resolvable:$false] %s1526_s16 }
 0x138   : > { %v2270_v33 = vpop.permute.xlu1 %511  ;;  %v2272_v34 = vpop.permute.xlu0 %424  ;;  %v806_v20 = vsel %vm454_vm2, %v804_v11, %v805_v5  ;;  %s1528_s21 = scalar_lea.vmem %s1527_s16, 256 }
 0x139   : > { %v867_v26 = vsel %vm857_vm5, %v1985_v27, %v2272_v34 }
 0x13a   : > { %833 = vrot.lane.b32.xlu1 %v649_v30, %s1624_s4  ;;  %782 = vrot.lane.b32.xlu0 %v598_v35, %s1623_s20 }
 0x13c   : > { %v715_v39 = vpop.permute.xlu1 %714  ;;  %v667_v40 = vpop.permute.xlu0 %666 }
 0x13d   : > { %v949_v44 = vsel %vm942_vm10, %v932_v31, %v715_v39  ;;  %v933_v28 = vsel %vm925_vm9, %v916_v1, %v667_v40  ;;  %v883_v39 = vsel %vm874_vm6, %v866_v38, %v2270_v33 }
 0x13e   : > { %680 = vrot.lane.b32.xlu1 %v649_v30, %s1621_s6  ;;  %629 = vrot.lane.b32.xlu0 %v598_v35, %s1620_s29  ;;  %s1373_s29 = sshll.u32 %s1264_s28, 7 }
 0x140   : > { %v562_v41 = vpop.permute.xlu1 %561  ;;  %v2279_v42 = vpop.permute.xlu0 %513 }
 0x141   : > { %v900_v40 = vsel %vm891_vm7, %v883_v39, %v562_v41  ;;  %v884_v24 = vsel %vm874_vm6, %v867_v26, %v2279_v42 }
 0x142   : > { %682 = vrot.lane.b32.xlu1 %v651_v36, %s1621_s6  ;;  %835 = vrot.lane.b32.xlu0 %v651_v36, %s1624_s4  ;;  %s1268_s6 = sshll.u32 %s177_s11, 4  ;;  %s1269_s6 = int_to_ptr.vmem [resolvable:$true] %s1268_s6 }
 0x143   : > { %p1529_p4 = scmp.lt.s32.totalorder %s1269_s6, %s1527_s16 }
 0x144   : > { %v769_v62 = vpop.permute.xlu1 %768  ;;  %v717_v63 = vpop.permute.xlu0 %716 }
 0x145   : > { %v966_v12 = vsel %vm959_vm11, %v949_v44, %v769_v62  ;;  %v950_v14 = vsel %vm942_vm10, %v933_v28, %v717_v63 }
 0x146   : > { %732 = vrot.lane.b32.xlu1 %v339_v49, %s1622_s7  ;;  %730 = vrot.lane.b32.xlu0 %v338_v50, %s1622_s7 }
 0x148   : > { %v616_v0 = vpop.permute.xlu1 %615  ;;  %v564_v2 = vpop.permute.xlu0 %563 }
 0x149   : > { %v917_v50 = vsel %vm908_vm8, %v900_v40, %v616_v0  ;;  %v901_v33 = vsel %vm891_vm7, %v884_v24, %v564_v2 }
 0x14a   : > { %786 = vrot.lane.b32.xlu1 %v755_v58, %s1623_s20  ;;  %784 = vrot.lane.b32.xlu0 %v753_v37, %s1623_s20  ;;  %s2436_s20 = scalar_lea.hbm %s2489_s3, %s1373_s29 }
 0x14c   : > { %v822_v53 = vpop.permute.xlu1 %821  ;;  %v771_v21 = vpop.permute.xlu0 %770 }
 0x14d   : > { %v983_v22 = vsel %vm976_vm12, %v966_v12, %v822_v53  ;;  %v967_v45 = vsel %vm959_vm11, %v950_v14, %v771_v21 }
 0x14e   : > { %839 = vrot.lane.b32.xlu1 %v808_v8, %s1624_s4  ;;  %837 = vrot.lane.b32.xlu0 %v806_v20, %s1624_s4  ;;  %s1522_s4 = scalar_lea.vmem %s1269_s6, 128 }
 0x14f   : > { %1417 = vmatprep.mubr.msk.f32.mxu0 %vm1005_vm13, %v983_v22  ;;  %p1523_p0 = scmp.ne.s32.totalorder %s1269_s6, %s1522_s4  ;;  %p1530_p5 = scmp.lt.s32.totalorder %s1528_s21, %s1522_s4 }
 0x150   : > { %v618_v60 = vpop.permute.xlu1 %617  ;;  %v427_v57 = vpop.permute.xlu0 %426 }
 0x151   : > { %v918_v5 = vsel %vm908_vm8, %v901_v33, %v618_v60  ;;  %v868_v8 = vsel %vm857_vm5, %v2017_v43, %v427_v57  ;;  %p1524_p1 = pnand %p1523_p0, %p1697_p3  ;;  %p1531_p6 = por %p1530_p5, %p1529_p4 }
 0x153   : > { %p1525_p2 = pneg %p1524_p1 }
 0x154   : > { %v824_v29 = vpop.permute.xlu1 %823  ;;  %v669_v46 = vpop.permute.xlu0 %668 }
 0x155   : > { %v984_v55 = vsel %vm976_vm12, %v967_v45, %v824_v29  ;;  %v934_v51 = vsel %vm925_vm9, %v917_v50, %v669_v46  ;;  %p1532_p7 = pnand %p1531_p6, %p1525_p2 }
 0x156   : > { %1418 = vmatmul.mubr.msk.f32.gmra.mxu0 %vm1005_vm13, %v984_v55 }
 0x158   : > { %v516_v15 = vpop.permute.xlu1 %515  ;;  %v429_v3 = vpop.permute.xlu0 %428 }
 0x159   : > { %v885_v20 = vsel %vm874_vm6, %v868_v8, %v516_v15  ;;  %v869_v43 = vsel %vm857_vm5, %v2024_v48, %v429_v3 }
 0x15c   : > { %v719_v7 = vpop.permute.xlu1 %718  ;;  %v671_v32 = vpop.permute.xlu0 %670 }
 0x15d   : > { %v951_v52 = vsel %vm942_vm10, %v934_v51, %v719_v7  ;;  %v935_v11 = vsel %vm925_vm9, %v918_v5, %v671_v32 }
 0x160   : > { %v566_v9 = vpop.permute.xlu1 %565  ;;  %v518_v30 = vpop.permute.xlu0 %517 }
 0x161   : > { %v902_v12 = vsel %vm891_vm7, %v885_v20, %v566_v9  ;;  %v886_v57 = vsel %vm874_vm6, %v869_v43, %v518_v30 }
 0x164   : > { %v773_v35 = vpop.permute.xlu1 %772  ;;  %v721_v18 = vpop.permute.xlu0 %720 }
 0x165   : > { %v968_v59 = vsel %vm959_vm11, %v951_v52, %v773_v35  ;;  %v952_v47 = vsel %vm942_vm10, %v935_v11, %v721_v18 }
 0x168   : > { %v620_v36 = vpop.permute.xlu1 %619  ;;  %v568_v49 = vpop.permute.xlu0 %567 }
 0x169   : > { %v919_v22 = vsel %vm908_vm8, %v902_v12, %v620_v36  ;;  %v903_v14 = vsel %vm891_vm7, %v886_v57, %v568_v49 }
 0x16c   : > { %v826_v61 = vpop.permute.xlu1 %825  ;;  %v775_v62 = vpop.permute.xlu0 %774 }
 0x16d   : > { %v985_v63 = vsel %vm976_vm12, %v968_v59, %v826_v61  ;;  %v969_v58 = vsel %vm959_vm11, %v952_v47, %v775_v62 }
 0x16e   : > { %1420 = vmatprep.mubr.msk.f32.mxu1 %vm1005_vm13, %v985_v63 }
 0x170   : > { %v622_v41 = vpop.permute.xlu1 %621  ;;  %v431_v4 = vpop.permute.xlu0 %430 }
 0x171   : > { %v920_v46 = vsel %vm908_vm8, %v903_v14, %v622_v41  ;;  %v870_v49 = vsel %vm857_vm5, %v2071_v16, %v431_v4 }
 0x174   : > { %v828_v37 = vpop.permute.xlu1 %827  ;;  %v673_v56 = vpop.permute.xlu0 %672 }
 0x175   : > { %v986_v27 = vsel %vm976_vm12, %v969_v58, %v828_v37  ;;  %v936_v6 = vsel %vm925_vm9, %v919_v22, %v673_v56 }
 0x176   : > { %1421 = vmatmul.mubr.msk.f32.vlgmr.msra.gmra.mxu1 %vm1005_vm13, %v986_v27 }
 0x178   : > { %v520_v34 = vpop.permute.xlu1 %519  ;;  %v433_v42 = vpop.permute.xlu0 %432 }
 0x179   : > { %v887_v50 = vsel %vm874_vm6, %v870_v49, %v520_v34  ;;  %v871_v16 = vsel %vm857_vm5, %v2079_v19, %v433_v42 }
 0x17c   : > { %v723_v54 = vpop.permute.xlu1 %722  ;;  %v675_v0 = vpop.permute.xlu0 %674 }
 0x17d   : > { %v953_v23 = vsel %vm942_vm10, %v936_v6, %v723_v54  ;;  %v937_v55 = vsel %vm925_vm9, %v920_v46, %v675_v0 }
 0x180   : > { %v570_v2 = vpop.permute.xlu1 %569  ;;  %v522_v13 = vpop.permute.xlu0 %521 }
 0x181   : > { %v904_v51 = vsel %vm891_vm7, %v887_v50, %v570_v2  ;;  %v888_v4 = vsel %vm874_vm6, %v871_v16, %v522_v13  ;;  %v2391_v13 = vld [vmem:[%s2488_s2] ss:$0 sm:$0xff] }
 0x184   : > { %v777_v31 = vpop.permute.xlu1 %776  ;;  %v725_v44 = vpop.permute.xlu0 %724 }
 0x185   : > { %v970_v25 = vsel %vm959_vm11, %v953_v23, %v777_v31  ;;  %v954_v15 = vsel %vm942_vm10, %v937_v55, %v725_v44 }
 0x188   : > { %v624_v53 = vpop.permute.xlu1 %623  ;;  %v572_v21 = vpop.permute.xlu0 %571 }
 0x189   : > { %v921_v61 = vsel %vm908_vm8, %v904_v51, %v624_v53  ;;  %v905_v5 = vsel %vm891_vm7, %v888_v4, %v572_v21 }
 0x18c   : > { %v830_v60 = vpop.permute.xlu1 %829  ;;  %v779_v1 = vpop.permute.xlu0 %778 }
 0x18d   : > { %v987_v28 = vsel %vm976_vm12, %v970_v25, %v830_v60  ;;  %v971_v7 = vsel %vm959_vm11, %v954_v15, %v779_v1 }
 0x18e   : > { %1423 = vmatprep.mubr.msk.f32.mxu1 %vm1005_vm13, %v987_v28 }
 0x190   : > { %v626_v45 = vpop.permute.xlu1 %625  ;;  %v435_v29 = vpop.permute.xlu0 %434 }
 0x191   : > { %v922_v58 = vsel %vm908_vm8, %v905_v5, %v626_v45  ;;  %v872_v44 = vsel %vm857_vm5, %v2147_v10, %v435_v29 }
 0x194   : > { %v832_v32 = vpop.permute.xlu1 %831  ;;  %v677_v9 = vpop.permute.xlu0 %676 }
 0x195   : > { %v988_v48 = vsel %vm976_vm12, %v971_v7, %v832_v32  ;;  %v938_v62 = vsel %vm925_vm9, %v921_v61, %v677_v9 }
 0x196   : > { %1424 = vmatmul.mubr.msk.f32.gmra.mxu1 %vm1005_vm13, %v988_v48 }
 0x198   : > { %v524_v3 = vpop.permute.xlu1 %523  ;;  %v437_v30 = vpop.permute.xlu0 %436 }
 0x199   : > { %v873_v8 = vsel %vm857_vm5, %v2156_v17, %v437_v30  ;;  %v889_v12 = vsel %vm874_vm6, %v872_v44, %v524_v3 }
 0x19c   : > { %v727_v35 = vpop.permute.xlu1 %726  ;;  %v679_v18 = vpop.permute.xlu0 %678 }
 0x19d   : > { %v955_v63 = vsel %vm942_vm10, %v938_v62, %v727_v35  ;;  %v939_v37 = vsel %vm925_vm9, %v922_v58, %v679_v18 }
 0x1a0   : > { %v574_v38 = vpop.permute.xlu1 %573  ;;  %v526_v39 = vpop.permute.xlu0 %525 }
 0x1a1   : > { %v890_v53 = vsel %vm874_vm6, %v873_v8, %v526_v39  ;;  %v906_v21 = vsel %vm891_vm7, %v889_v12, %v574_v38 }
 0x1a4   : > { %v781_v40 = vpop.permute.xlu1 %780  ;;  %v729_v36 = vpop.permute.xlu0 %728 }
 0x1a5   : > { %v972_v26 = vsel %vm959_vm11, %v955_v63, %v781_v40  ;;  %v956_v56 = vsel %vm942_vm10, %v939_v37, %v729_v36 }
 0x1a8   : > { %v628_v52 = vpop.permute.xlu1 %627  ;;  %v576_v59 = vpop.permute.xlu0 %575 }
 0x1a9   : > { %v907_v22 = vsel %vm891_vm7, %v890_v53, %v576_v59  ;;  %v923_v10 = vsel %vm908_vm8, %v906_v21, %v628_v52 }
 0x1ac   : > { %v834_v24 = vpop.permute.xlu1 %833  ;;  %v783_v33 = vpop.permute.xlu0 %782 }
 0x1ad   : > { %v989_v41 = vsel %vm976_vm12, %v972_v26, %v834_v24  ;;  %v973_v27 = vsel %vm959_vm11, %v956_v56, %v783_v33 }
 0x1ae   : > { %1426 = vmatprep.mubr.msk.f32.mxu1 %vm1005_vm13, %v989_v41 }
 0x1b0   : > { %v681_v11 = vpop.permute.xlu1 %680  ;;  %v630_v47 = vpop.permute.xlu0 %629 }
 0x1b1   : > { %v924_v1 = vsel %vm908_vm8, %v907_v22, %v630_v47  ;;  %v940_v17 = vsel %vm925_vm9, %v923_v10, %v681_v11 }
 0x1b4   : > { %v683_v34 = vpop.permute.xlu1 %682  ;;  %v836_v54 = vpop.permute.xlu0 %835 }
 0x1b5   : > { %v990_v19 = vsel %vm976_vm12, %v973_v27, %v836_v54  ;;  %v941_v28 = vsel %vm925_vm9, %v924_v1, %v683_v34 }
 0x1b6   : > { %1427 = vmatmul.mubr.msk.f32.gmra.mxu1 %vm1005_vm13, %v990_v19 }
 0x1b7   : > { %v1410_v42 = vpop.f32.mrf.mxu0 }
 0x1b8   : > { %v733_v0 = vpop.permute.xlu1 %732  ;;  %v731_v2 = vpop.permute.xlu0 %730  ;;  %v1130_v6 = vadd.f32 %v1410_v42, %v2391_v13 }
 0x1b9   : > { %v1124_v31 = vpop.f32.mrf.mxu0  ;;  %v958_v43 = vsel %vm942_vm10, %v941_v28, %v733_v0  ;;  %v957_v57 = vsel %vm942_vm10, %v940_v17, %v731_v2 }
 0x1ba   : > { %v1125_v20 = vadd.f32 %v2391_v13, %v1124_v31  ;;  %v1204_v14 = vmax.f32 %v1130_v6, 0.0 }
 0x1bc   : > { %v1203_v23 = vmax.f32 %v1125_v20, 0.0  ;;  %v787_v25 = vpop.permute.xlu1 %786  ;;  %v785_v60 = vpop.permute.xlu0 %784 }
 0x1bd   : > { %v975_v45 = vsel %vm959_vm11, %v958_v43, %v787_v25  ;;  %v974_v29 = vsel %vm959_vm11, %v957_v57, %v785_v60 }
 0x1be   : > { %1219 = vxpose.xlu0.b32.start [1/16] (narrow) %v1203_v23, 8 }
 0x1c0   : > { %v840_v46 = vpop.permute.xlu1 %839  ;;  %v838_v55 = vpop.permute.xlu0 %837 }
 0x1c1   : > { %v992_v15 = vsel %vm976_vm12, %v975_v45, %v840_v46  ;;  %v991_v7 = vsel %vm976_vm12, %v974_v29, %v838_v55 }
 0x1c2   : > { %1220 = vxpose.xlu0.b32.cont [2/16] (narrow) %v1204_v14, 8  ;;  %1429 = vmatprep.mubr.msk.f32.mxu1 %vm1005_vm13, %v991_v7 }
 0x1c3   : > { %1430 = vmatmul.mubr.msk.f32.gmra.mxu1 %vm1005_vm13, %v992_v15 }
 0x1d7   : > { %v1413_v32 = vpop.f32.mrf.mxu0 }
 0x1d8   : > { %v1140_v3 = vadd.f32 %v1413_v32, %v2391_v13 }
 0x1d9   : > { %v1134_v9 = vpop.f32.mrf.mxu0 }
 0x1da   : > { %v1135_v48 = vadd.f32 %v2391_v13, %v1134_v9  ;;  %v1206_v35 = vmax.f32 %v1140_v3, 0.0 }
 0x1dc   : > { %v1205_v30 = vmax.f32 %v1135_v48, 0.0 }
 0x1de   : > { %1221 = vxpose.xlu0.b32.cont [3/16] (narrow) %v1205_v30, 8 }
 0x1e2   : > { %1222 = vxpose.xlu0.b32.cont [4/16] (narrow) %v1206_v35, 8 }
 0x1f7   : > { %v1416_v18 = vpop.f32.mrf.mxu0 }
 0x1f8   : > { %v1150_v40 = vadd.f32 %v1416_v18, %v2391_v13 }
 0x1f9   : > { %v1144_v38 = vpop.f32.mrf.mxu0 }
 0x1fa   : > { %v1145_v39 = vadd.f32 %v2391_v13, %v1144_v38  ;;  %v1208_v49 = vmax.f32 %v1150_v40, 0.0 }
 0x1fc   : > { %v1207_v36 = vmax.f32 %v1145_v39, 0.0 }
 0x1fe   : > { %1223 = vxpose.xlu0.b32.cont [5/16] (narrow) %v1207_v36, 8 }
 0x202   : > { %1224 = vxpose.xlu0.b32.cont [6/16] (narrow) %v1208_v49, 8 }
 0x216   : > { %v1419_v50 = vpop.f32.mrf.mxu0 }
 0x217   : > { %v1160_v59 = vadd.f32 %v1419_v50, %v2391_v13 }
 0x218   : > { %v1154_v51 = vpop.f32.mrf.mxu0 }
 0x219   : > { %v1155_v52 = vadd.f32 %v2391_v13, %v1154_v51  ;;  %v1210_v62 = vmax.f32 %v1160_v59, 0.0 }
 0x21b   : > { %v1209_v61 = vmax.f32 %v1155_v52, 0.0 }
 0x21d   : > { %1225 = vxpose.xlu0.b32.cont [7/16] (narrow) %v1209_v61, 8 }
 0x221   : > { %1226 = vxpose.xlu0.b32.cont [8/16] (narrow) %v1210_v62, 8 }
 0x236   : > { %v1422_v63 = vpop.f32.mrf.mxu1 }
 0x237   : > { %v1170_v33 = vadd.f32 %v1422_v63, %v2391_v13 }
 0x238   : > { %v1164_v26 = vpop.f32.mrf.mxu1 }
 0x239   : > { %v1165_v24 = vadd.f32 %v2391_v13, %v1164_v26  ;;  %v1212_v16 = vmax.f32 %v1170_v33, 0.0 }
 0x23b   : > { %v1211_v41 = vmax.f32 %v1165_v24, 0.0 }
 0x23d   : > { %1227 = vxpose.xlu0.b32.cont [9/16] (narrow) %v1211_v41, 8 }
 0x241   : > { %1228 = vxpose.xlu0.b32.cont [10/16] (narrow) %v1212_v16, 8 }
 0x256   : > { %v1425_v4 = vpop.f32.mrf.mxu1 }
 0x257   : > { %v1180_v47 = vadd.f32 %v1425_v4, %v2391_v13 }
 0x258   : > { %v1174_v5 = vpop.f32.mrf.mxu1 }
 0x259   : > { %v1175_v11 = vadd.f32 %v2391_v13, %v1174_v5  ;;  %v1214_v37 = vmax.f32 %v1180_v47, 0.0 }
 0x25b   : > { %v1213_v58 = vmax.f32 %v1175_v11, 0.0 }
 0x25d   : > { %1229 = vxpose.xlu0.b32.cont [11/16] (narrow) %v1213_v58, 8 }
 0x261   : > { %1230 = vxpose.xlu0.b32.cont [12/16] (narrow) %v1214_v37, 8 }
 0x276   : > { %v1428_v56 = vpop.f32.mrf.mxu1 }
 0x277   : > { %v1190_v54 = vadd.f32 %v1428_v56, %v2391_v13 }
 0x278   : > { %v1184_v27 = vpop.f32.mrf.mxu1 }
 0x279   : > { %v1185_v34 = vadd.f32 %v2391_v13, %v1184_v27  ;;  %v1216_v42 = vmax.f32 %v1190_v54, 0.0 }
 0x27b   : > { %v1215_v19 = vmax.f32 %v1185_v34, 0.0 }
 0x27d   : > { %1231 = vxpose.xlu0.b32.cont [13/16] (narrow) %v1215_v19, 8 }
 0x281   : > { %1232 = vxpose.xlu0.b32.cont [14/16] (narrow) %v1216_v42, 8 }
 0x283   : > { %v1431_v0 = vpop.f32.mrf.mxu1 }
 0x284   : > { %v1200_v44 = vadd.f32 %v1431_v0, %v2391_v13 }
 0x285   : > { %v1194_v2 = vpop.f32.mrf.mxu1 }
 0x286   : > { %v1195_v31 = vadd.f32 %v2391_v13, %v1194_v2  ;;  %v1218_v20 = vmax.f32 %v1200_v44, 0.0 }
 0x288   : > { %v1217_v8 = vmax.f32 %v1195_v31, 0.0 }
 0x28a   : > { %1233 = vxpose.xlu0.b32.cont [15/16] (narrow) %v1217_v8, 8 }
 0x28e   : > { %1234 = vxpose.xlu0.b32.end [16/16] (narrow) %v1218_v20, 8 }
 0x2ce   : > { %v1235_v12 = vpop.trf.xlu0 }
 0x2cf   : > { %1251 = vst [vmem:[%s177_s11] sm:$0xff] %v1235_v12 }
 0x2d0   : > { %1535 = shalt.err (!%p1532_p7)
}
 0x2d1   : > { %s1536_s5 = scalar_lea.hbm %s2436_s20, 128  ;;  %s1540_s27 = scalar_lea.hbm %s2489_s3, 512 }
 0x2d2   : > { %p1537_p9 = scmp.ne.s32.totalorder %s2436_s20, %s1536_s5  ;;  %p1541_p12 = scmp.lt.s32.totalorder %s2436_s20, %s2489_s3 }
 0x2d3   : > { %p1542_p13 = scmp.lt.s32.totalorder %s1540_s27, %s1536_s5 }
 0x2d4   : > { %p1538_p10 = pnand %p1537_p9, %p1697_p3 }
 0x2d5   : > { %p1543_p0 = por %p1542_p13, %p1541_p12 }
 0x2d6   : > { %p1539_p11 = pneg %p1538_p10 }
 0x2d8   : > { %p1544_p1 = pnand %p1543_p0, %p1539_p11 }
 0x2da   : > { %1547 = shalt.err (!%p1544_p1)
}
 0x2db   : > { %1442 = dma.vmem_to_hbm [thread:$0]  (%p1697_p3), %s1269_s6, 128, %s2436_s20, %s1253_s9  }
 0x2dc PF: > { %p1448_p2 = scmp.ge.s32.totalorder %s1614_s19, 2  ;;  %s1280_s7 = sand.u32 1, %s1586_s12  }
 0x2dd   : > { %s1281_s10 = scalar_lea.sflag [#allocation4], %s1280_s7 }
 0x2de   : > { %p1445_p4 = pnand %p1448_p2, %p1706_p8 }
 0x2e0   : > { %p1446_p5 = pneg %p1445_p4 }
 0x2e2   : > { %1581 = dma.done.wait (%p1446_p5), %s1281_s10, 128  }
 0x2e3   : > { %1583 = vsyncadd (%p1446_p5), %s1281_s10, 4294967168  ;;  %s16_s19 = sadd.s32 1, %s1614_s19   ;;  %s2494_s12 = smov %s1590_s13 }
 0x2e4   : > { %p13_p6 = scmp.ge.s32.totalorder %s16_s19, 6   ;;  %s2495_s13 = smov %s1594_s14 }
 0x2e5   : > { %s2496_s14 = smov %s1715_s30  ;;  %s2497_s15 = smov %s1606_s17 }
 0x2e6   : > { %s2498_s16 = smov %s1610_s18  ;;  %s2499_s17 = smov %s2502_s22 }
 0x2e7   : > { %s2500_s18 = smov %s2506_s23  ;;  %15 = sbr.rel (!%p13_p6) target bundleno = 5 (0x5), region = 73 }
 0x2ec   :  { %1286 = vsyncpa [#allocation4], 1 }
 0x2ed   :  { %1288 = vsyncpa [#allocation4 + $0x1], 1 }

</bundles_post_ra>
